<compile_context>
chip_gen: v7x
topology: tpu7x:2x2x1
jax: 0.10.0
libtpu: 0.0.40
codegen_flags: <defaults>
</compile_context>

<pallas_src>
import functools

import jax
import jax.numpy as jnp
from jax import lax
from jax.experimental import pallas as pl
from jax.experimental.pallas import tpu as pltpu

D_MODEL = 32
NHEAD = 4
DIM_FF = 64
EPS = 1e-5


# ------------------------------ fused kernel --------------------------------

def _decoder_layer_kernel(*refs, nhead, B, T, S, has_pos, has_qpos):
  f32 = jnp.float32
  it = iter(refs)
  tgt_ref = next(it)                                   # (T*B, D)
  qpos_ref = next(it) if has_qpos else None            # (T*B, D)
  mem_ref = next(it)                                   # (S*B, D)
  pos_ref = next(it) if has_pos else None              # (S*B, D)
  w_in_ref = next(it)                                  # (2, D, 3D) [0]=self [1]=cross
  w_out_ref = next(it)                                 # (2, D, D)
  b_in_ref = next(it)                                  # (2, 3D)
  vec_ref = next(it)                                   # (8, D)
  out_ref = next(it)                                   # (T*B, D)

  D = tgt_ref.shape[-1]
  dh = D // nhead
  TB, SB = T * B, S * B

  tgt = tgt_ref[...].astype(f32)
  mem = mem_ref[...].astype(f32)
  qpos = qpos_ref[...].astype(f32) if has_qpos else None
  pos = pos_ref[...].astype(f32) if has_pos else None
  b_in = b_in_ref[...].astype(f32)                     # (2, 3D)
  vecs = vec_ref[...].astype(f32)                      # (8, D)
  sa_bo, ca_bo = vecs[0:1], vecs[1:2]
  n1g, n1b = vecs[2:3], vecs[3:4]
  n2g, n2b = vecs[4:5], vecs[5:6]
  n3g, n3b = vecs[6:7], vecs[7:8]

  # Additive masks that keep the flattened (row = t*B + b) attention per-batch.
  def batch_mask(nq, nk):
    qi = lax.broadcasted_iota(jnp.int32, (nq, nk), 0) % B
    ki = lax.broadcasted_iota(jnp.int32, (nq, nk), 1) % B
    return jnp.where(qi == ki, 0.0, -1e30).astype(f32)

  self_mask = batch_mask(TB, TB)
  cross_mask = batch_mask(TB, SB)

  def layer_norm(z, g, b):
    mu = jnp.mean(z, axis=-1, keepdims=True)
    var = jnp.mean(z * z, axis=-1, keepdims=True) - mu * mu
    return (z - mu) * lax.rsqrt(var + EPS) * g + b

  def attend(q, k, v, w_o, b_o, mask):
    """q (TB, D) already scaled, k/v (L, D).  Per-head softmax attention with
    the output projection folded into the head loop (no concat)."""
    acc = None
    for h in range(nhead):
      sl = slice(h * dh, (h + 1) * dh)
      s = lax.dot_general(q[:, sl], k[:, sl], (((1,), (1,)), ((), ())),
                          preferred_element_type=f32) + mask       # (TB, L)
      s = s - jnp.max(s, axis=-1, keepdims=True)
      p = jnp.exp(s)
      p = p * pl.reciprocal(jnp.sum(p, axis=-1, keepdims=True), approx=True)
      oh = jnp.dot(p, v[:, sl], preferred_element_type=f32)        # (TB, dh)
      term = jnp.dot(oh, w_o[sl, :], preferred_element_type=f32)   # (TB, D)
      acc = term if acc is None else acc + term
    return acc + b_o

  # ---- self attention: q = k = tgt + query_pos, v = tgt (one MXU issue) ----
  qk_in = tgt + qpos if has_qpos else tgt
  sa_proj = jnp.dot(jnp.concatenate([qk_in, tgt], axis=0), w_in_ref[0],
                    preferred_element_type=f32) + b_in[0:1]         # (2TB, 3D)
  q_sa = sa_proj[:TB, :D]
  k_sa = sa_proj[:TB, D:2 * D]
  v_sa = sa_proj[TB:, 2 * D:]
  x = layer_norm(tgt + attend(q_sa, k_sa, v_sa, w_out_ref[0], sa_bo, self_mask),
                 n1g, n1b)

  # ---- cross attention: q = x + query_pos, k = memory + pos, v = memory ----
  q_in = x + qpos if has_qpos else x
  k_in = mem + pos if has_pos else mem
  ca_proj = jnp.dot(jnp.concatenate([q_in, k_in, mem], axis=0), w_in_ref[1],
                    preferred_element_type=f32) + b_in[1:2]         # (TB+2SB, 3D)
  q_ca = ca_proj[:TB, :D]
  k_ca = ca_proj[TB:TB + SB, D:2 * D]
  v_ca = ca_proj[TB + SB:, 2 * D:]
  x = layer_norm(x + attend(q_ca, k_ca, v_ca, w_out_ref[1], ca_bo, cross_mask),
                 n2g, n2b)

  # ---- FFN branch: reference forward_post adds `tgt` (not the FFN result)
  #      before norm3, so the FFN matmuls are dead; residual reproduced as-is.
  # TODO(synk): if the upstream module is ever fixed to add tgt2, re-enable the
  # linear1/relu/linear2 path here.
  x = layer_norm(x + x, n3g, n3b)

  out_ref[...] = x.astype(out_ref.dtype)


# ------------------------------ wrapper --------------------------------------

def transformer_decoder_layer(tgt, memory, prepared, pos=None, query_pos=None,
                              nhead=NHEAD):
  """Fused forward_post decoder layer.  tgt: (T, B, D), memory: (S, B, D)."""
  T, B, D = tgt.shape
  S = memory.shape[0]
  has_qpos = query_pos is not None
  has_pos = pos is not None

  # Contiguous reshapes only (free); batch isolation handled in-kernel.
  args = [tgt.reshape(T * B, D)]
  if has_qpos:
    args.append(query_pos.reshape(T * B, D))
  args.append(memory.reshape(S * B, D))
  if has_pos:
    args.append(pos.reshape(S * B, D))
  args += [prepared["w_in"], prepared["w_out"], prepared["b_in"],
           prepared["vecs"]]

  out_flat = pl.pallas_call(
      functools.partial(_decoder_layer_kernel, nhead=nhead, B=B, T=T, S=S,
                        has_pos=has_pos, has_qpos=has_qpos),
      out_shape=jax.ShapeDtypeStruct((T * B, D), tgt.dtype),
  )(*args)
  return out_flat.reshape(T, B, D)


# ------------------------- one-time weight preparation ------------------------

def prepare_params(params, d_model=D_MODEL, nhead=NHEAD):
  """PyTorch (out, in) layouts -> (in, out); fuse Q/K/V in-proj into one
  (D, 3D) matrix per attention with the 1/sqrt(dh) query scale folded into the
  Q columns/bias; pack everything into 4 slabs so the kernel has few inputs.
  FFN weights intentionally NOT prepared (forward_post discards the FFN)."""
  dh = d_model // nhead
  scale = 1.0 / float(dh) ** 0.5

  def fused_in_proj(ap):
    wq, wk, wv = jnp.split(ap["in_proj_weight"], 3, axis=0)
    bq, bk, bv = jnp.split(ap["in_proj_bias"], 3, axis=0)
    w = jnp.concatenate([wq.T * scale, wk.T, wv.T], axis=1)        # (D, 3D)
    b = jnp.concatenate([bq * scale, bk, bv])                      # (3D,)
    return w, b

  sa = params["self_attn"]
  ca = params["multihead_attn"]
  sa_w, sa_b = fused_in_proj(sa)
  ca_w, ca_b = fused_in_proj(ca)

  return {
      "w_in": jnp.stack([sa_w, ca_w]),                             # (2, D, 3D)
      "w_out": jnp.stack([sa["out_proj_weight"].T,
                          ca["out_proj_weight"].T]),               # (2, D, D)
      "b_in": jnp.stack([sa_b, ca_b]),                             # (2, 3D)
      "vecs": jnp.stack([sa["out_proj_bias"], ca["out_proj_bias"],
                         params["norm1_g"], params["norm1_b"],
                         params["norm2_g"], params["norm2_b"],
                         params["norm3_g"], params["norm3_b"]]),   # (8, D)
  }


# ------------------------------ parameter init --------------------------------

def _attn_params(key, d_model):
  k1, k2, k3, k4 = jax.random.split(key, 4)
  s = 0.05
  return {
      "in_proj_weight": (s * jax.random.normal(k1, (3 * d_model, d_model))
                         ).astype(jnp.float32),
      "in_proj_bias": (s * jax.random.normal(k2, (3 * d_model,))
                       ).astype(jnp.float32),
      "out_proj_weight": (s * jax.random.normal(k3, (d_model, d_model))
                          ).astype(jnp.float32),
      "out_proj_bias": (s * jax.random.normal(k4, (d_model,))
                        ).astype(jnp.float32),
  }


def init_params(key, d_model=D_MODEL, dim_ff=DIM_FF):
  ks = jax.random.split(key, 8)
  s = 0.05
  return {
      "self_attn": _attn_params(ks[0], d_model),
      "multihead_attn": _attn_params(ks[1], d_model),
      # FFN params exist on the module, but its output is unused in forward_post.
      "linear1_w": (s * jax.random.normal(ks[2], (dim_ff, d_model))).astype(jnp.float32),
      "linear1_b": (s * jax.random.normal(ks[3], (dim_ff,))).astype(jnp.float32),
      "linear2_w": (s * jax.random.normal(ks[4], (d_model, dim_ff))).astype(jnp.float32),
      "linear2_b": (s * jax.random.normal(ks[5], (d_model,))).astype(jnp.float32),
      "norm1_g": jnp.ones((d_model,), jnp.float32),
      "norm1_b": jnp.zeros((d_model,), jnp.float32),
      "norm2_g": jnp.ones((d_model,), jnp.float32),
      "norm2_b": jnp.zeros((d_model,), jnp.float32),
      "norm3_g": jnp.ones((d_model,), jnp.float32),
      "norm3_b": jnp.zeros((d_model,), jnp.float32),
  }


# ------------------------------ pure-JAX reference ----------------------------

def _reference_decoder_layer(tgt, memory, params, pos, query_pos, nhead=NHEAD):
  def mha(q, k, v, ap):
    L, B, D = q.shape
    S = k.shape[0]
    H, Dh = nhead, D // nhead
    wq, wk, wv = jnp.split(ap["in_proj_weight"], 3, axis=0)
    bq, bk, bv = jnp.split(ap["in_proj_bias"], 3, axis=0)
    scale = 1.0 / float(Dh) ** 0.5
    qp = (q.reshape(L * B, D) @ wq.T + bq) * scale
    kp = k.reshape(S * B, D) @ wk.T + bk
    vp = v.reshape(S * B, D) @ wv.T + bv
    qp = qp.reshape(L, B * H, Dh).transpose(1, 0, 2)
    kp = kp.reshape(S, B * H, Dh).transpose(1, 0, 2)
    vp = vp.reshape(S, B * H, Dh).transpose(1, 0, 2)
    s = jnp.einsum("bld,bsd->bls", qp, kp)
    p = jax.nn.softmax(s, axis=-1)
    o = jnp.einsum("bls,bsd->bld", p, vp)
    o = o.transpose(1, 0, 2).reshape(L * B, D)
    o = o @ ap["out_proj_weight"].T + ap["out_proj_bias"]
    return o.reshape(L, B, D)

  def ln(x, g, b):
    mu = x.mean(-1, keepdims=True)
    var = ((x - mu) ** 2).mean(-1, keepdims=True)
    return (x - mu) / jnp.sqrt(var + EPS) * g + b

  qk = tgt + query_pos
  t = ln(tgt + mha(qk, qk, tgt, params["self_attn"]),
         params["norm1_g"], params["norm1_b"])
  t = ln(t + mha(t + query_pos, memory + pos, memory, params["multihead_attn"]),
         params["norm2_g"], params["norm2_b"])
  # FFN result discarded by the reference forward_post -> residual is t + t
  t = ln(t + t, params["norm3_g"], params["norm3_b"])
  return t


# ------------------------------ demo -------------------------------------------

if __name__ == "__main__":
  T, S, B = 8, 16, 2          # target len, memory len, batch
  key = jax.random.PRNGKey(0)
  k_tgt, k_mem, k_pos, k_qpos, k_par = jax.random.split(key, 5)

  tgt = jax.random.normal(k_tgt, (T, B, D_MODEL), dtype=jnp.float32)
  memory = jax.random.normal(k_mem, (S, B, D_MODEL), dtype=jnp.float32)
  pos = jax.random.normal(k_pos, (S, B, D_MODEL), dtype=jnp.float32)
  query_pos = jax.random.normal(k_qpos, (T, B, D_MODEL), dtype=jnp.float32)

  params = init_params(k_par)
  prepared = prepare_params(params)       # one-time weight prep, outside jit

  fwd = jax.jit(lambda t, m, p, qp: transformer_decoder_layer(
      t, m, prepared, pos=p, query_pos=qp, nhead=NHEAD))
  out = fwd(tgt, memory, pos, query_pos)
  jax.block_until_ready(out)

  assert out.shape == (T, B, D_MODEL)
  assert bool(jnp.all(jnp.isfinite(out)))

  ref = _reference_decoder_layer(tgt, memory, params, pos, query_pos)
  assert bool(jnp.allclose(out, ref, atol=5e-2, rtol=5e-2))

  print("KERNEL_OK")
</pallas_src>

<mosaic_0001>
module attributes {stable_mosaic.version = 11 : i64} {
  func.func @_decoder_layer_kernel(%arg0: memref<16x32xf32, #tpu.memory_space<vmem>>, %arg1: memref<16x32xf32, #tpu.memory_space<vmem>>, %arg2: memref<32x32xf32, #tpu.memory_space<vmem>>, %arg3: memref<32x32xf32, #tpu.memory_space<vmem>>, %arg4: memref<2x32x96xf32, #tpu.memory_space<vmem>>, %arg5: memref<2x32x32xf32, #tpu.memory_space<vmem>>, %arg6: memref<2x96xf32, #tpu.memory_space<vmem>>, %arg7: memref<8x32xf32, #tpu.memory_space<vmem>>, %arg8: memref<16x32xf32, #tpu.memory_space<vmem>>) attributes {dimension_semantics = [], scalar_prefetch = 0 : i64, scratch_operands = 0 : i64, tpu.core_type = #tpu.core_type<tc>} {
    %c0 = arith.constant 0 : index
    %c0_0 = arith.constant 0 : index
    %0 = vector.load %arg0[%c0, %c0_0] : memref<16x32xf32, #tpu.memory_space<vmem>>, vector<16x32xf32>
    %c0_1 = arith.constant 0 : index
    %c0_2 = arith.constant 0 : index
    %1 = vector.load %arg2[%c0_1, %c0_2] : memref<32x32xf32, #tpu.memory_space<vmem>>, vector<32x32xf32>
    %c0_3 = arith.constant 0 : index
    %c0_4 = arith.constant 0 : index
    %2 = vector.load %arg1[%c0_3, %c0_4] : memref<16x32xf32, #tpu.memory_space<vmem>>, vector<16x32xf32>
    %c0_5 = arith.constant 0 : index
    %c0_6 = arith.constant 0 : index
    %3 = vector.load %arg3[%c0_5, %c0_6] : memref<32x32xf32, #tpu.memory_space<vmem>>, vector<32x32xf32>
    %c0_7 = arith.constant 0 : index
    %c0_8 = arith.constant 0 : index
    %4 = vector.load %arg6[%c0_7, %c0_8] : memref<2x96xf32, #tpu.memory_space<vmem>>, vector<2x96xf32>
    %c0_9 = arith.constant 0 : index
    %c0_10 = arith.constant 0 : index
    %5 = vector.load %arg7[%c0_9, %c0_10] : memref<8x32xf32, #tpu.memory_space<vmem>>, vector<8x32xf32>
    %6 = vector.extract_strided_slice %5 {offsets = [0, 0], sizes = [1, 32], strides = [1, 1]} : vector<8x32xf32> to vector<1x32xf32>
    %7 = vector.extract_strided_slice %5 {offsets = [1, 0], sizes = [1, 32], strides = [1, 1]} : vector<8x32xf32> to vector<1x32xf32>
    %8 = vector.extract_strided_slice %5 {offsets = [2, 0], sizes = [1, 32], strides = [1, 1]} : vector<8x32xf32> to vector<1x32xf32>
    %9 = vector.extract_strided_slice %5 {offsets = [3, 0], sizes = [1, 32], strides = [1, 1]} : vector<8x32xf32> to vector<1x32xf32>
    %10 = vector.extract_strided_slice %5 {offsets = [4, 0], sizes = [1, 32], strides = [1, 1]} : vector<8x32xf32> to vector<1x32xf32>
    %11 = vector.extract_strided_slice %5 {offsets = [5, 0], sizes = [1, 32], strides = [1, 1]} : vector<8x32xf32> to vector<1x32xf32>
    %12 = vector.extract_strided_slice %5 {offsets = [6, 0], sizes = [1, 32], strides = [1, 1]} : vector<8x32xf32> to vector<1x32xf32>
    %13 = vector.extract_strided_slice %5 {offsets = [7, 0], sizes = [1, 32], strides = [1, 1]} : vector<8x32xf32> to vector<1x32xf32>
    %14 = tpu.iota {dimensions = array<i32: 0>} : vector<16x16xi32>
    %c2_i32 = arith.constant 2 : i32
    %c0_i32 = arith.constant 0 : i32
    %15 = arith.cmpi eq, %c2_i32, %c0_i32 : i32
    %c1_i32 = arith.constant 1 : i32
    %16 = arith.select %15, %c1_i32, %c2_i32 : i32
    %17 = vector.broadcast %16 : i32 to vector<16x16xi32>
    %18 = arith.remsi %14, %17 : vector<16x16xi32>
    %c0_i32_11 = arith.constant 0 : i32
    %19 = vector.broadcast %c0_i32_11 : i32 to vector<16x16xi32>
    %20 = arith.cmpi ne, %18, %19 : vector<16x16xi32>
    %c0_i32_12 = arith.constant 0 : i32
    %21 = vector.broadcast %c0_i32_12 : i32 to vector<16x16xi32>
    %22 = arith.cmpi slt, %18, %21 : vector<16x16xi32>
    %c0_i32_13 = arith.constant 0 : i32
    %23 = arith.cmpi slt, %16, %c0_i32_13 : i32
    %24 = vector.broadcast %23 : i1 to vector<16x16xi1>
    %25 = vector.broadcast %24 : vector<16x16xi1> to vector<16x16xi1>
    %26 = arith.xori %22, %25 : vector<16x16xi1>
    %27 = arith.andi %26, %20 : vector<16x16xi1>
    %28 = vector.broadcast %16 : i32 to vector<16x16xi32>
    %29 = arith.addi %18, %28 : vector<16x16xi32>
    %30 = arith.select %27, %29, %18 : vector<16x16xi1>, vector<16x16xi32>
    %31 = tpu.iota {dimensions = array<i32: 1>} : vector<16x16xi32>
    %c2_i32_14 = arith.constant 2 : i32
    %c0_i32_15 = arith.constant 0 : i32
    %32 = arith.cmpi eq, %c2_i32_14, %c0_i32_15 : i32
    %c1_i32_16 = arith.constant 1 : i32
    %33 = arith.select %32, %c1_i32_16, %c2_i32_14 : i32
    %34 = vector.broadcast %33 : i32 to vector<16x16xi32>
    %35 = arith.remsi %31, %34 : vector<16x16xi32>
    %c0_i32_17 = arith.constant 0 : i32
    %36 = vector.broadcast %c0_i32_17 : i32 to vector<16x16xi32>
    %37 = arith.cmpi ne, %35, %36 : vector<16x16xi32>
    %c0_i32_18 = arith.constant 0 : i32
    %38 = vector.broadcast %c0_i32_18 : i32 to vector<16x16xi32>
    %39 = arith.cmpi slt, %35, %38 : vector<16x16xi32>
    %c0_i32_19 = arith.constant 0 : i32
    %40 = arith.cmpi slt, %33, %c0_i32_19 : i32
    %41 = vector.broadcast %40 : i1 to vector<16x16xi1>
    %42 = vector.broadcast %41 : vector<16x16xi1> to vector<16x16xi1>
    %43 = arith.xori %39, %42 : vector<16x16xi1>
    %44 = arith.andi %43, %37 : vector<16x16xi1>
    %45 = vector.broadcast %33 : i32 to vector<16x16xi32>
    %46 = arith.addi %35, %45 : vector<16x16xi32>
    %47 = arith.select %44, %46, %35 : vector<16x16xi1>, vector<16x16xi32>
    %48 = arith.cmpi eq, %30, %47 : vector<16x16xi32>
    %cst = arith.constant 0.000000e+00 : f32
    %cst_20 = arith.constant -1.000000e+30 : f32
    %49 = vector.broadcast %cst : f32 to vector<16x16xf32>
    %50 = vector.broadcast %cst_20 : f32 to vector<16x16xf32>
    %51 = arith.select %48, %49, %50 : vector<16x16xi1>, vector<16x16xf32>
    %52 = tpu.iota {dimensions = array<i32: 0>} : vector<16x32xi32>
    %c2_i32_21 = arith.constant 2 : i32
    %c0_i32_22 = arith.constant 0 : i32
    %53 = arith.cmpi eq, %c2_i32_21, %c0_i32_22 : i32
    %c1_i32_23 = arith.constant 1 : i32
    %54 = arith.select %53, %c1_i32_23, %c2_i32_21 : i32
    %55 = vector.broadcast %54 : i32 to vector<16x32xi32>
    %56 = arith.remsi %52, %55 : vector<16x32xi32>
    %c0_i32_24 = arith.constant 0 : i32
    %57 = vector.broadcast %c0_i32_24 : i32 to vector<16x32xi32>
    %58 = arith.cmpi ne, %56, %57 : vector<16x32xi32>
    %c0_i32_25 = arith.constant 0 : i32
    %59 = vector.broadcast %c0_i32_25 : i32 to vector<16x32xi32>
    %60 = arith.cmpi slt, %56, %59 : vector<16x32xi32>
    %c0_i32_26 = arith.constant 0 : i32
    %61 = arith.cmpi slt, %54, %c0_i32_26 : i32
    %62 = vector.broadcast %61 : i1 to vector<16x32xi1>
    %63 = vector.broadcast %62 : vector<16x32xi1> to vector<16x32xi1>
    %64 = arith.xori %60, %63 : vector<16x32xi1>
    %65 = arith.andi %64, %58 : vector<16x32xi1>
    %66 = vector.broadcast %54 : i32 to vector<16x32xi32>
    %67 = arith.addi %56, %66 : vector<16x32xi32>
    %68 = arith.select %65, %67, %56 : vector<16x32xi1>, vector<16x32xi32>
    %69 = tpu.iota {dimensions = array<i32: 1>} : vector<16x32xi32>
    %c2_i32_27 = arith.constant 2 : i32
    %c0_i32_28 = arith.constant 0 : i32
    %70 = arith.cmpi eq, %c2_i32_27, %c0_i32_28 : i32
    %c1_i32_29 = arith.constant 1 : i32
    %71 = arith.select %70, %c1_i32_29, %c2_i32_27 : i32
    %72 = vector.broadcast %71 : i32 to vector<16x32xi32>
    %73 = arith.remsi %69, %72 : vector<16x32xi32>
    %c0_i32_30 = arith.constant 0 : i32
    %74 = vector.broadcast %c0_i32_30 : i32 to vector<16x32xi32>
    %75 = arith.cmpi ne, %73, %74 : vector<16x32xi32>
    %c0_i32_31 = arith.constant 0 : i32
    %76 = vector.broadcast %c0_i32_31 : i32 to vector<16x32xi32>
    %77 = arith.cmpi slt, %73, %76 : vector<16x32xi32>
    %c0_i32_32 = arith.constant 0 : i32
    %78 = arith.cmpi slt, %71, %c0_i32_32 : i32
    %79 = vector.broadcast %78 : i1 to vector<16x32xi1>
    %80 = vector.broadcast %79 : vector<16x32xi1> to vector<16x32xi1>
    %81 = arith.xori %77, %80 : vector<16x32xi1>
    %82 = arith.andi %81, %75 : vector<16x32xi1>
    %83 = vector.broadcast %71 : i32 to vector<16x32xi32>
    %84 = arith.addi %73, %83 : vector<16x32xi32>
    %85 = arith.select %82, %84, %73 : vector<16x32xi1>, vector<16x32xi32>
    %86 = arith.cmpi eq, %68, %85 : vector<16x32xi32>
    %cst_33 = arith.constant 0.000000e+00 : f32
    %cst_34 = arith.constant -1.000000e+30 : f32
    %87 = vector.broadcast %cst_33 : f32 to vector<16x32xf32>
    %88 = vector.broadcast %cst_34 : f32 to vector<16x32xf32>
    %89 = arith.select %86, %87, %88 : vector<16x32xi1>, vector<16x32xf32>
    %90 = arith.addf %0, %2 : vector<16x32xf32>
    %91 = tpu.concatenate %90, %0 in 0 : vector<16x32xf32>, vector<16x32xf32> -> vector<32x32xf32>
    %c0_35 = arith.constant 0 : index
    %c0_36 = arith.constant 0 : index
    %c0_37 = arith.constant 0 : index
    %92 = vector.load %arg4[%c0_35, %c0_36, %c0_37] : memref<2x32x96xf32, #tpu.memory_space<vmem>>, vector<1x32x96xf32>
    %93 = vector.shape_cast %92 : vector<1x32x96xf32> to vector<32x96xf32>
    %cst_38 = arith.constant dense<0.000000e+00> : vector<32x96xf32>
    %94 = tpu.matmul %91, %93, %cst_38 {dimension_numbers = #tpu.dot_dimension_numbers<[1], [0], [0], [1], [0, 0, 1, 1], [], []>} : vector<32x32xf32>, vector<32x96xf32>, vector<32x96xf32> -> vector<32x96xf32>
    %95 = vector.extract_strided_slice %4 {offsets = [0, 0], sizes = [1, 96], strides = [1, 1]} : vector<2x96xf32> to vector<1x96xf32>
    %96 = vector.broadcast %95 : vector<1x96xf32> to vector<32x96xf32>
    %97 = arith.addf %94, %96 : vector<32x96xf32>
    %98 = vector.extract_strided_slice %97 {offsets = [0, 0], sizes = [16, 32], strides = [1, 1]} : vector<32x96xf32> to vector<16x32xf32>
    %99 = vector.extract_strided_slice %97 {offsets = [0, 32], sizes = [16, 32], strides = [1, 1]} : vector<32x96xf32> to vector<16x32xf32>
    %100 = vector.extract_strided_slice %97 {offsets = [16, 64], sizes = [16, 32], strides = [1, 1]} : vector<32x96xf32> to vector<16x32xf32>
    %c0_39 = arith.constant 0 : index
    %c0_40 = arith.constant 0 : index
    %c0_41 = arith.constant 0 : index
    %101 = vector.load %arg5[%c0_39, %c0_40, %c0_41] : memref<2x32x32xf32, #tpu.memory_space<vmem>>, vector<1x32x32xf32>
    %102 = vector.shape_cast %101 : vector<1x32x32xf32> to vector<32x32xf32>
    %103 = vector.extract_strided_slice %98 {offsets = [0, 0], sizes = [16, 8], strides = [1, 1]} : vector<16x32xf32> to vector<16x8xf32>
    %104 = vector.extract_strided_slice %99 {offsets = [0, 0], sizes = [16, 8], strides = [1, 1]} : vector<16x32xf32> to vector<16x8xf32>
    %cst_42 = arith.constant dense<0.000000e+00> : vector<16x16xf32>
    %105 = tpu.matmul %103, %104, %cst_42 {dimension_numbers = #tpu.dot_dimension_numbers<[1], [1], [0], [0], [0, 0, 1, 0], [], []>} : vector<16x8xf32>, vector<16x8xf32>, vector<16x16xf32> -> vector<16x16xf32>
    %106 = arith.addf %105, %51 : vector<16x16xf32>
    %cst_43 = arith.constant dense<0xFF800000> : vector<16xf32>
    %107 = vector.multi_reduction <maximumf>, %106, %cst_43 [1] : vector<16x16xf32> to vector<16xf32>
    %108 = vector.shape_cast %107 : vector<16xf32> to vector<16x1xf32>
    %109 = vector.broadcast %108 : vector<16x1xf32> to vector<16x16xf32>
    %110 = arith.subf %106, %109 : vector<16x16xf32>
    %111 = math.exp %110 : vector<16x16xf32>
    %cst_44 = arith.constant dense<0.000000e+00> : vector<16xf32>
    %112 = vector.multi_reduction <add>, %111, %cst_44 [1] : vector<16x16xf32> to vector<16xf32>
    %113 = vector.shape_cast %112 : vector<16xf32> to vector<16x1xf32>
    %114 = tpu.reciprocal %113 {approx = true} : vector<16x1xf32> -> vector<16x1xf32>
    %115 = vector.broadcast %114 : vector<16x1xf32> to vector<16x16xf32>
    %116 = arith.mulf %111, %115 : vector<16x16xf32>
    %117 = vector.extract_strided_slice %100 {offsets = [0, 0], sizes = [16, 8], strides = [1, 1]} : vector<16x32xf32> to vector<16x8xf32>
    %cst_45 = arith.constant dense<0.000000e+00> : vector<16x8xf32>
    %118 = tpu.matmul %116, %117, %cst_45 {dimension_numbers = #tpu.dot_dimension_numbers<[1], [0], [0], [1], [0, 0, 1, 1], [], []>} : vector<16x16xf32>, vector<16x8xf32>, vector<16x8xf32> -> vector<16x8xf32>
    %119 = vector.extract_strided_slice %102 {offsets = [0, 0], sizes = [8, 32], strides = [1, 1]} : vector<32x32xf32> to vector<8x32xf32>
    %cst_46 = arith.constant dense<0.000000e+00> : vector<16x32xf32>
    %120 = tpu.matmul %118, %119, %cst_46 {dimension_numbers = #tpu.dot_dimension_numbers<[1], [0], [0], [1], [0, 0, 1, 1], [], []>} : vector<16x8xf32>, vector<8x32xf32>, vector<16x32xf32> -> vector<16x32xf32>
    %121 = vector.extract_strided_slice %98 {offsets = [0, 8], sizes = [16, 8], strides = [1, 1]} : vector<16x32xf32> to vector<16x8xf32>
    %122 = vector.extract_strided_slice %99 {offsets = [0, 8], sizes = [16, 8], strides = [1, 1]} : vector<16x32xf32> to vector<16x8xf32>
    %cst_47 = arith.constant dense<0.000000e+00> : vector<16x16xf32>
    %123 = tpu.matmul %121, %122, %cst_47 {dimension_numbers = #tpu.dot_dimension_numbers<[1], [1], [0], [0], [0, 0, 1, 0], [], []>} : vector<16x8xf32>, vector<16x8xf32>, vector<16x16xf32> -> vector<16x16xf32>
    %124 = arith.addf %123, %51 : vector<16x16xf32>
    %cst_48 = arith.constant dense<0xFF800000> : vector<16xf32>
    %125 = vector.multi_reduction <maximumf>, %124, %cst_48 [1] : vector<16x16xf32> to vector<16xf32>
    %126 = vector.shape_cast %125 : vector<16xf32> to vector<16x1xf32>
    %127 = vector.broadcast %126 : vector<16x1xf32> to vector<16x16xf32>
    %128 = arith.subf %124, %127 : vector<16x16xf32>
    %129 = math.exp %128 : vector<16x16xf32>
    %cst_49 = arith.constant dense<0.000000e+00> : vector<16xf32>
    %130 = vector.multi_reduction <add>, %129, %cst_49 [1] : vector<16x16xf32> to vector<16xf32>
    %131 = vector.shape_cast %130 : vector<16xf32> to vector<16x1xf32>
    %132 = tpu.reciprocal %131 {approx = true} : vector<16x1xf32> -> vector<16x1xf32>
    %133 = vector.broadcast %132 : vector<16x1xf32> to vector<16x16xf32>
    %134 = arith.mulf %129, %133 : vector<16x16xf32>
    %135 = vector.extract_strided_slice %100 {offsets = [0, 8], sizes = [16, 8], strides = [1, 1]} : vector<16x32xf32> to vector<16x8xf32>
    %cst_50 = arith.constant dense<0.000000e+00> : vector<16x8xf32>
    %136 = tpu.matmul %134, %135, %cst_50 {dimension_numbers = #tpu.dot_dimension_numbers<[1], [0], [0], [1], [0, 0, 1, 1], [], []>} : vector<16x16xf32>, vector<16x8xf32>, vector<16x8xf32> -> vector<16x8xf32>
    %137 = vector.extract_strided_slice %102 {offsets = [8, 0], sizes = [8, 32], strides = [1, 1]} : vector<32x32xf32> to vector<8x32xf32>
    %cst_51 = arith.constant dense<0.000000e+00> : vector<16x32xf32>
    %138 = tpu.matmul %136, %137, %cst_51 {dimension_numbers = #tpu.dot_dimension_numbers<[1], [0], [0], [1], [0, 0, 1, 1], [], []>} : vector<16x8xf32>, vector<8x32xf32>, vector<16x32xf32> -> vector<16x32xf32>
    %139 = arith.addf %120, %138 : vector<16x32xf32>
    %140 = vector.extract_strided_slice %98 {offsets = [0, 16], sizes = [16, 8], strides = [1, 1]} : vector<16x32xf32> to vector<16x8xf32>
    %141 = vector.extract_strided_slice %99 {offsets = [0, 16], sizes = [16, 8], strides = [1, 1]} : vector<16x32xf32> to vector<16x8xf32>
    %cst_52 = arith.constant dense<0.000000e+00> : vector<16x16xf32>
    %142 = tpu.matmul %140, %141, %cst_52 {dimension_numbers = #tpu.dot_dimension_numbers<[1], [1], [0], [0], [0, 0, 1, 0], [], []>} : vector<16x8xf32>, vector<16x8xf32>, vector<16x16xf32> -> vector<16x16xf32>
    %143 = arith.addf %142, %51 : vector<16x16xf32>
    %cst_53 = arith.constant dense<0xFF800000> : vector<16xf32>
    %144 = vector.multi_reduction <maximumf>, %143, %cst_53 [1] : vector<16x16xf32> to vector<16xf32>
    %145 = vector.shape_cast %144 : vector<16xf32> to vector<16x1xf32>
    %146 = vector.broadcast %145 : vector<16x1xf32> to vector<16x16xf32>
    %147 = arith.subf %143, %146 : vector<16x16xf32>
    %148 = math.exp %147 : vector<16x16xf32>
    %cst_54 = arith.constant dense<0.000000e+00> : vector<16xf32>
    %149 = vector.multi_reduction <add>, %148, %cst_54 [1] : vector<16x16xf32> to vector<16xf32>
    %150 = vector.shape_cast %149 : vector<16xf32> to vector<16x1xf32>
    %151 = tpu.reciprocal %150 {approx = true} : vector<16x1xf32> -> vector<16x1xf32>
    %152 = vector.broadcast %151 : vector<16x1xf32> to vector<16x16xf32>
    %153 = arith.mulf %148, %152 : vector<16x16xf32>
    %154 = vector.extract_strided_slice %100 {offsets = [0, 16], sizes = [16, 8], strides = [1, 1]} : vector<16x32xf32> to vector<16x8xf32>
    %cst_55 = arith.constant dense<0.000000e+00> : vector<16x8xf32>
    %155 = tpu.matmul %153, %154, %cst_55 {dimension_numbers = #tpu.dot_dimension_numbers<[1], [0], [0], [1], [0, 0, 1, 1], [], []>} : vector<16x16xf32>, vector<16x8xf32>, vector<16x8xf32> -> vector<16x8xf32>
    %156 = vector.extract_strided_slice %102 {offsets = [16, 0], sizes = [8, 32], strides = [1, 1]} : vector<32x32xf32> to vector<8x32xf32>
    %cst_56 = arith.constant dense<0.000000e+00> : vector<16x32xf32>
    %157 = tpu.matmul %155, %156, %cst_56 {dimension_numbers = #tpu.dot_dimension_numbers<[1], [0], [0], [1], [0, 0, 1, 1], [], []>} : vector<16x8xf32>, vector<8x32xf32>, vector<16x32xf32> -> vector<16x32xf32>
    %158 = arith.addf %139, %157 : vector<16x32xf32>
    %159 = vector.extract_strided_slice %98 {offsets = [0, 24], sizes = [16, 8], strides = [1, 1]} : vector<16x32xf32> to vector<16x8xf32>
    %160 = vector.extract_strided_slice %99 {offsets = [0, 24], sizes = [16, 8], strides = [1, 1]} : vector<16x32xf32> to vector<16x8xf32>
    %cst_57 = arith.constant dense<0.000000e+00> : vector<16x16xf32>
    %161 = tpu.matmul %159, %160, %cst_57 {dimension_numbers = #tpu.dot_dimension_numbers<[1], [1], [0], [0], [0, 0, 1, 0], [], []>} : vector<16x8xf32>, vector<16x8xf32>, vector<16x16xf32> -> vector<16x16xf32>
    %162 = arith.addf %161, %51 : vector<16x16xf32>
    %cst_58 = arith.constant dense<0xFF800000> : vector<16xf32>
    %163 = vector.multi_reduction <maximumf>, %162, %cst_58 [1] : vector<16x16xf32> to vector<16xf32>
    %164 = vector.shape_cast %163 : vector<16xf32> to vector<16x1xf32>
    %165 = vector.broadcast %164 : vector<16x1xf32> to vector<16x16xf32>
    %166 = arith.subf %162, %165 : vector<16x16xf32>
    %167 = math.exp %166 : vector<16x16xf32>
    %cst_59 = arith.constant dense<0.000000e+00> : vector<16xf32>
    %168 = vector.multi_reduction <add>, %167, %cst_59 [1] : vector<16x16xf32> to vector<16xf32>
    %169 = vector.shape_cast %168 : vector<16xf32> to vector<16x1xf32>
    %170 = tpu.reciprocal %169 {approx = true} : vector<16x1xf32> -> vector<16x1xf32>
    %171 = vector.broadcast %170 : vector<16x1xf32> to vector<16x16xf32>
    %172 = arith.mulf %167, %171 : vector<16x16xf32>
    %173 = vector.extract_strided_slice %100 {offsets = [0, 24], sizes = [16, 8], strides = [1, 1]} : vector<16x32xf32> to vector<16x8xf32>
    %cst_60 = arith.constant dense<0.000000e+00> : vector<16x8xf32>
    %174 = tpu.matmul %172, %173, %cst_60 {dimension_numbers = #tpu.dot_dimension_numbers<[1], [0], [0], [1], [0, 0, 1, 1], [], []>} : vector<16x16xf32>, vector<16x8xf32>, vector<16x8xf32> -> vector<16x8xf32>
    %175 = vector.extract_strided_slice %102 {offsets = [24, 0], sizes = [8, 32], strides = [1, 1]} : vector<32x32xf32> to vector<8x32xf32>
    %cst_61 = arith.constant dense<0.000000e+00> : vector<16x32xf32>
    %176 = tpu.matmul %174, %175, %cst_61 {dimension_numbers = #tpu.dot_dimension_numbers<[1], [0], [0], [1], [0, 0, 1, 1], [], []>} : vector<16x8xf32>, vector<8x32xf32>, vector<16x32xf32> -> vector<16x32xf32>
    %177 = arith.addf %158, %176 : vector<16x32xf32>
    %178 = vector.broadcast %6 : vector<1x32xf32> to vector<16x32xf32>
    %179 = arith.addf %177, %178 : vector<16x32xf32>
    %180 = arith.addf %0, %179 : vector<16x32xf32>
    %cst_62 = arith.constant dense<0.000000e+00> : vector<16xf32>
    %181 = vector.multi_reduction <add>, %180, %cst_62 [1] : vector<16x32xf32> to vector<16xf32>
    %182 = vector.shape_cast %181 : vector<16xf32> to vector<16x1xf32>
    %cst_63 = arith.constant 3.200000e+01 : f32
    %183 = vector.broadcast %cst_63 : f32 to vector<16x1xf32>
    %184 = arith.divf %182, %183 : vector<16x1xf32>
    %185 = arith.mulf %180, %180 : vector<16x32xf32>
    %cst_64 = arith.constant dense<0.000000e+00> : vector<16xf32>
    %186 = vector.multi_reduction <add>, %185, %cst_64 [1] : vector<16x32xf32> to vector<16xf32>
    %187 = vector.shape_cast %186 : vector<16xf32> to vector<16x1xf32>
    %cst_65 = arith.constant 3.200000e+01 : f32
    %188 = vector.broadcast %cst_65 : f32 to vector<16x1xf32>
    %189 = arith.divf %187, %188 : vector<16x1xf32>
    %190 = arith.mulf %184, %184 : vector<16x1xf32>
    %191 = arith.subf %189, %190 : vector<16x1xf32>
    %192 = vector.broadcast %184 : vector<16x1xf32> to vector<16x32xf32>
    %193 = arith.subf %180, %192 : vector<16x32xf32>
    %cst_66 = arith.constant 9.99999974E-6 : f32
    %194 = vector.broadcast %cst_66 : f32 to vector<16x1xf32>
    %195 = arith.addf %191, %194 : vector<16x1xf32>
    %196 = math.rsqrt %195 : vector<16x1xf32>
    %197 = vector.broadcast %196 : vector<16x1xf32> to vector<16x32xf32>
    %198 = arith.mulf %193, %197 : vector<16x32xf32>
    %199 = vector.broadcast %8 : vector<1x32xf32> to vector<16x32xf32>
    %200 = arith.mulf %198, %199 : vector<16x32xf32>
    %201 = vector.broadcast %9 : vector<1x32xf32> to vector<16x32xf32>
    %202 = arith.addf %200, %201 : vector<16x32xf32>
    %203 = arith.addf %202, %2 : vector<16x32xf32>
    %204 = arith.addf %1, %3 : vector<32x32xf32>
    %205 = tpu.concatenate %203, %204, %1 in 0 : vector<16x32xf32>, vector<32x32xf32>, vector<32x32xf32> -> vector<80x32xf32>
    %c1 = arith.constant 1 : index
    %c0_67 = arith.constant 0 : index
    %c0_68 = arith.constant 0 : index
    %206 = vector.load %arg4[%c1, %c0_67, %c0_68] : memref<2x32x96xf32, #tpu.memory_space<vmem>>, vector<1x32x96xf32>
    %207 = vector.shape_cast %206 : vector<1x32x96xf32> to vector<32x96xf32>
    %cst_69 = arith.constant dense<0.000000e+00> : vector<80x96xf32>
    %208 = tpu.matmul %205, %207, %cst_69 {dimension_numbers = #tpu.dot_dimension_numbers<[1], [0], [0], [1], [0, 0, 1, 1], [], []>} : vector<80x32xf32>, vector<32x96xf32>, vector<80x96xf32> -> vector<80x96xf32>
    %209 = vector.extract_strided_slice %4 {offsets = [1, 0], sizes = [1, 96], strides = [1, 1]} : vector<2x96xf32> to vector<1x96xf32>
    %210 = vector.broadcast %209 : vector<1x96xf32> to vector<80x96xf32>
    %211 = arith.addf %208, %210 : vector<80x96xf32>
    %212 = vector.extract_strided_slice %211 {offsets = [0, 0], sizes = [16, 32], strides = [1, 1]} : vector<80x96xf32> to vector<16x32xf32>
    %213 = vector.extract_strided_slice %211 {offsets = [16, 32], sizes = [32, 32], strides = [1, 1]} : vector<80x96xf32> to vector<32x32xf32>
    %214 = vector.extract_strided_slice %211 {offsets = [48, 64], sizes = [32, 32], strides = [1, 1]} : vector<80x96xf32> to vector<32x32xf32>
    %c1_70 = arith.constant 1 : index
    %c0_71 = arith.constant 0 : index
    %c0_72 = arith.constant 0 : index
    %215 = vector.load %arg5[%c1_70, %c0_71, %c0_72] : memref<2x32x32xf32, #tpu.memory_space<vmem>>, vector<1x32x32xf32>
    %216 = vector.shape_cast %215 : vector<1x32x32xf32> to vector<32x32xf32>
    %217 = vector.extract_strided_slice %212 {offsets = [0, 0], sizes = [16, 8], strides = [1, 1]} : vector<16x32xf32> to vector<16x8xf32>
    %218 = vector.extract_strided_slice %213 {offsets = [0, 0], sizes = [32, 8], strides = [1, 1]} : vector<32x32xf32> to vector<32x8xf32>
    %cst_73 = arith.constant dense<0.000000e+00> : vector<16x32xf32>
    %219 = tpu.matmul %217, %218, %cst_73 {dimension_numbers = #tpu.dot_dimension_numbers<[1], [1], [0], [0], [0, 0, 1, 0], [], []>} : vector<16x8xf32>, vector<32x8xf32>, vector<16x32xf32> -> vector<16x32xf32>
    %220 = arith.addf %219, %89 : vector<16x32xf32>
    %cst_74 = arith.constant dense<0xFF800000> : vector<16xf32>
    %221 = vector.multi_reduction <maximumf>, %220, %cst_74 [1] : vector<16x32xf32> to vector<16xf32>
    %222 = vector.shape_cast %221 : vector<16xf32> to vector<16x1xf32>
    %223 = vector.broadcast %222 : vector<16x1xf32> to vector<16x32xf32>
    %224 = arith.subf %220, %223 : vector<16x32xf32>
    %225 = math.exp %224 : vector<16x32xf32>
    %cst_75 = arith.constant dense<0.000000e+00> : vector<16xf32>
    %226 = vector.multi_reduction <add>, %225, %cst_75 [1] : vector<16x32xf32> to vector<16xf32>
    %227 = vector.shape_cast %226 : vector<16xf32> to vector<16x1xf32>
    %228 = tpu.reciprocal %227 {approx = true} : vector<16x1xf32> -> vector<16x1xf32>
    %229 = vector.broadcast %228 : vector<16x1xf32> to vector<16x32xf32>
    %230 = arith.mulf %225, %229 : vector<16x32xf32>
    %231 = vector.extract_strided_slice %214 {offsets = [0, 0], sizes = [32, 8], strides = [1, 1]} : vector<32x32xf32> to vector<32x8xf32>
    %cst_76 = arith.constant dense<0.000000e+00> : vector<16x8xf32>
    %232 = tpu.matmul %230, %231, %cst_76 {dimension_numbers = #tpu.dot_dimension_numbers<[1], [0], [0], [1], [0, 0, 1, 1], [], []>} : vector<16x32xf32>, vector<32x8xf32>, vector<16x8xf32> -> vector<16x8xf32>
    %233 = vector.extract_strided_slice %216 {offsets = [0, 0], sizes = [8, 32], strides = [1, 1]} : vector<32x32xf32> to vector<8x32xf32>
    %cst_77 = arith.constant dense<0.000000e+00> : vector<16x32xf32>
    %234 = tpu.matmul %232, %233, %cst_77 {dimension_numbers = #tpu.dot_dimension_numbers<[1], [0], [0], [1], [0, 0, 1, 1], [], []>} : vector<16x8xf32>, vector<8x32xf32>, vector<16x32xf32> -> vector<16x32xf32>
    %235 = vector.extract_strided_slice %212 {offsets = [0, 8], sizes = [16, 8], strides = [1, 1]} : vector<16x32xf32> to vector<16x8xf32>
    %236 = vector.extract_strided_slice %213 {offsets = [0, 8], sizes = [32, 8], strides = [1, 1]} : vector<32x32xf32> to vector<32x8xf32>
    %cst_78 = arith.constant dense<0.000000e+00> : vector<16x32xf32>
    %237 = tpu.matmul %235, %236, %cst_78 {dimension_numbers = #tpu.dot_dimension_numbers<[1], [1], [0], [0], [0, 0, 1, 0], [], []>} : vector<16x8xf32>, vector<32x8xf32>, vector<16x32xf32> -> vector<16x32xf32>
    %238 = arith.addf %237, %89 : vector<16x32xf32>
    %cst_79 = arith.constant dense<0xFF800000> : vector<16xf32>
    %239 = vector.multi_reduction <maximumf>, %238, %cst_79 [1] : vector<16x32xf32> to vector<16xf32>
    %240 = vector.shape_cast %239 : vector<16xf32> to vector<16x1xf32>
    %241 = vector.broadcast %240 : vector<16x1xf32> to vector<16x32xf32>
    %242 = arith.subf %238, %241 : vector<16x32xf32>
    %243 = math.exp %242 : vector<16x32xf32>
    %cst_80 = arith.constant dense<0.000000e+00> : vector<16xf32>
    %244 = vector.multi_reduction <add>, %243, %cst_80 [1] : vector<16x32xf32> to vector<16xf32>
    %245 = vector.shape_cast %244 : vector<16xf32> to vector<16x1xf32>
    %246 = tpu.reciprocal %245 {approx = true} : vector<16x1xf32> -> vector<16x1xf32>
    %247 = vector.broadcast %246 : vector<16x1xf32> to vector<16x32xf32>
    %248 = arith.mulf %243, %247 : vector<16x32xf32>
    %249 = vector.extract_strided_slice %214 {offsets = [0, 8], sizes = [32, 8], strides = [1, 1]} : vector<32x32xf32> to vector<32x8xf32>
    %cst_81 = arith.constant dense<0.000000e+00> : vector<16x8xf32>
    %250 = tpu.matmul %248, %249, %cst_81 {dimension_numbers = #tpu.dot_dimension_numbers<[1], [0], [0], [1], [0, 0, 1, 1], [], []>} : vector<16x32xf32>, vector<32x8xf32>, vector<16x8xf32> -> vector<16x8xf32>
    %251 = vector.extract_strided_slice %216 {offsets = [8, 0], sizes = [8, 32], strides = [1, 1]} : vector<32x32xf32> to vector<8x32xf32>
    %cst_82 = arith.constant dense<0.000000e+00> : vector<16x32xf32>
    %252 = tpu.matmul %250, %251, %cst_82 {dimension_numbers = #tpu.dot_dimension_numbers<[1], [0], [0], [1], [0, 0, 1, 1], [], []>} : vector<16x8xf32>, vector<8x32xf32>, vector<16x32xf32> -> vector<16x32xf32>
    %253 = arith.addf %234, %252 : vector<16x32xf32>
    %254 = vector.extract_strided_slice %212 {offsets = [0, 16], sizes = [16, 8], strides = [1, 1]} : vector<16x32xf32> to vector<16x8xf32>
    %255 = vector.extract_strided_slice %213 {offsets = [0, 16], sizes = [32, 8], strides = [1, 1]} : vector<32x32xf32> to vector<32x8xf32>
    %cst_83 = arith.constant dense<0.000000e+00> : vector<16x32xf32>
    %256 = tpu.matmul %254, %255, %cst_83 {dimension_numbers = #tpu.dot_dimension_numbers<[1], [1], [0], [0], [0, 0, 1, 0], [], []>} : vector<16x8xf32>, vector<32x8xf32>, vector<16x32xf32> -> vector<16x32xf32>
    %257 = arith.addf %256, %89 : vector<16x32xf32>
    %cst_84 = arith.constant dense<0xFF800000> : vector<16xf32>
    %258 = vector.multi_reduction <maximumf>, %257, %cst_84 [1] : vector<16x32xf32> to vector<16xf32>
    %259 = vector.shape_cast %258 : vector<16xf32> to vector<16x1xf32>
    %260 = vector.broadcast %259 : vector<16x1xf32> to vector<16x32xf32>
    %261 = arith.subf %257, %260 : vector<16x32xf32>
    %262 = math.exp %261 : vector<16x32xf32>
    %cst_85 = arith.constant dense<0.000000e+00> : vector<16xf32>
    %263 = vector.multi_reduction <add>, %262, %cst_85 [1] : vector<16x32xf32> to vector<16xf32>
    %264 = vector.shape_cast %263 : vector<16xf32> to vector<16x1xf32>
    %265 = tpu.reciprocal %264 {approx = true} : vector<16x1xf32> -> vector<16x1xf32>
    %266 = vector.broadcast %265 : vector<16x1xf32> to vector<16x32xf32>
    %267 = arith.mulf %262, %266 : vector<16x32xf32>
    %268 = vector.extract_strided_slice %214 {offsets = [0, 16], sizes = [32, 8], strides = [1, 1]} : vector<32x32xf32> to vector<32x8xf32>
    %cst_86 = arith.constant dense<0.000000e+00> : vector<16x8xf32>
    %269 = tpu.matmul %267, %268, %cst_86 {dimension_numbers = #tpu.dot_dimension_numbers<[1], [0], [0], [1], [0, 0, 1, 1], [], []>} : vector<16x32xf32>, vector<32x8xf32>, vector<16x8xf32> -> vector<16x8xf32>
    %270 = vector.extract_strided_slice %216 {offsets = [16, 0], sizes = [8, 32], strides = [1, 1]} : vector<32x32xf32> to vector<8x32xf32>
    %cst_87 = arith.constant dense<0.000000e+00> : vector<16x32xf32>
    %271 = tpu.matmul %269, %270, %cst_87 {dimension_numbers = #tpu.dot_dimension_numbers<[1], [0], [0], [1], [0, 0, 1, 1], [], []>} : vector<16x8xf32>, vector<8x32xf32>, vector<16x32xf32> -> vector<16x32xf32>
    %272 = arith.addf %253, %271 : vector<16x32xf32>
    %273 = vector.extract_strided_slice %212 {offsets = [0, 24], sizes = [16, 8], strides = [1, 1]} : vector<16x32xf32> to vector<16x8xf32>
    %274 = vector.extract_strided_slice %213 {offsets = [0, 24], sizes = [32, 8], strides = [1, 1]} : vector<32x32xf32> to vector<32x8xf32>
    %cst_88 = arith.constant dense<0.000000e+00> : vector<16x32xf32>
    %275 = tpu.matmul %273, %274, %cst_88 {dimension_numbers = #tpu.dot_dimension_numbers<[1], [1], [0], [0], [0, 0, 1, 0], [], []>} : vector<16x8xf32>, vector<32x8xf32>, vector<16x32xf32> -> vector<16x32xf32>
    %276 = arith.addf %275, %89 : vector<16x32xf32>
    %cst_89 = arith.constant dense<0xFF800000> : vector<16xf32>
    %277 = vector.multi_reduction <maximumf>, %276, %cst_89 [1] : vector<16x32xf32> to vector<16xf32>
    %278 = vector.shape_cast %277 : vector<16xf32> to vector<16x1xf32>
    %279 = vector.broadcast %278 : vector<16x1xf32> to vector<16x32xf32>
    %280 = arith.subf %276, %279 : vector<16x32xf32>
    %281 = math.exp %280 : vector<16x32xf32>
    %cst_90 = arith.constant dense<0.000000e+00> : vector<16xf32>
    %282 = vector.multi_reduction <add>, %281, %cst_90 [1] : vector<16x32xf32> to vector<16xf32>
    %283 = vector.shape_cast %282 : vector<16xf32> to vector<16x1xf32>
    %284 = tpu.reciprocal %283 {approx = true} : vector<16x1xf32> -> vector<16x1xf32>
    %285 = vector.broadcast %284 : vector<16x1xf32> to vector<16x32xf32>
    %286 = arith.mulf %281, %285 : vector<16x32xf32>
    %287 = vector.extract_strided_slice %214 {offsets = [0, 24], sizes = [32, 8], strides = [1, 1]} : vector<32x32xf32> to vector<32x8xf32>
    %cst_91 = arith.constant dense<0.000000e+00> : vector<16x8xf32>
    %288 = tpu.matmul %286, %287, %cst_91 {dimension_numbers = #tpu.dot_dimension_numbers<[1], [0], [0], [1], [0, 0, 1, 1], [], []>} : vector<16x32xf32>, vector<32x8xf32>, vector<16x8xf32> -> vector<16x8xf32>
    %289 = vector.extract_strided_slice %216 {offsets = [24, 0], sizes = [8, 32], strides = [1, 1]} : vector<32x32xf32> to vector<8x32xf32>
    %cst_92 = arith.constant dense<0.000000e+00> : vector<16x32xf32>
    %290 = tpu.matmul %288, %289, %cst_92 {dimension_numbers = #tpu.dot_dimension_numbers<[1], [0], [0], [1], [0, 0, 1, 1], [], []>} : vector<16x8xf32>, vector<8x32xf32>, vector<16x32xf32> -> vector<16x32xf32>
    %291 = arith.addf %272, %290 : vector<16x32xf32>
    %292 = vector.broadcast %7 : vector<1x32xf32> to vector<16x32xf32>
    %293 = arith.addf %291, %292 : vector<16x32xf32>
    %294 = arith.addf %202, %293 : vector<16x32xf32>
    %cst_93 = arith.constant dense<0.000000e+00> : vector<16xf32>
    %295 = vector.multi_reduction <add>, %294, %cst_93 [1] : vector<16x32xf32> to vector<16xf32>
    %296 = vector.shape_cast %295 : vector<16xf32> to vector<16x1xf32>
    %cst_94 = arith.constant 3.200000e+01 : f32
    %297 = vector.broadcast %cst_94 : f32 to vector<16x1xf32>
    %298 = arith.divf %296, %297 : vector<16x1xf32>
    %299 = arith.mulf %294, %294 : vector<16x32xf32>
    %cst_95 = arith.constant dense<0.000000e+00> : vector<16xf32>
    %300 = vector.multi_reduction <add>, %299, %cst_95 [1] : vector<16x32xf32> to vector<16xf32>
    %301 = vector.shape_cast %300 : vector<16xf32> to vector<16x1xf32>
    %cst_96 = arith.constant 3.200000e+01 : f32
    %302 = vector.broadcast %cst_96 : f32 to vector<16x1xf32>
    %303 = arith.divf %301, %302 : vector<16x1xf32>
    %304 = arith.mulf %298, %298 : vector<16x1xf32>
    %305 = arith.subf %303, %304 : vector<16x1xf32>
    %306 = vector.broadcast %298 : vector<16x1xf32> to vector<16x32xf32>
    %307 = arith.subf %294, %306 : vector<16x32xf32>
    %cst_97 = arith.constant 9.99999974E-6 : f32
    %308 = vector.broadcast %cst_97 : f32 to vector<16x1xf32>
    %309 = arith.addf %305, %308 : vector<16x1xf32>
    %310 = math.rsqrt %309 : vector<16x1xf32>
    %311 = vector.broadcast %310 : vector<16x1xf32> to vector<16x32xf32>
    %312 = arith.mulf %307, %311 : vector<16x32xf32>
    %313 = vector.broadcast %10 : vector<1x32xf32> to vector<16x32xf32>
    %314 = arith.mulf %312, %313 : vector<16x32xf32>
    %315 = vector.broadcast %11 : vector<1x32xf32> to vector<16x32xf32>
    %316 = arith.addf %314, %315 : vector<16x32xf32>
    %317 = arith.addf %316, %316 : vector<16x32xf32>
    %cst_98 = arith.constant dense<0.000000e+00> : vector<16xf32>
    %318 = vector.multi_reduction <add>, %317, %cst_98 [1] : vector<16x32xf32> to vector<16xf32>
    %319 = vector.shape_cast %318 : vector<16xf32> to vector<16x1xf32>
    %cst_99 = arith.constant 3.200000e+01 : f32
    %320 = vector.broadcast %cst_99 : f32 to vector<16x1xf32>
    %321 = arith.divf %319, %320 : vector<16x1xf32>
    %322 = arith.mulf %317, %317 : vector<16x32xf32>
    %cst_100 = arith.constant dense<0.000000e+00> : vector<16xf32>
    %323 = vector.multi_reduction <add>, %322, %cst_100 [1] : vector<16x32xf32> to vector<16xf32>
    %324 = vector.shape_cast %323 : vector<16xf32> to vector<16x1xf32>
    %cst_101 = arith.constant 3.200000e+01 : f32
    %325 = vector.broadcast %cst_101 : f32 to vector<16x1xf32>
    %326 = arith.divf %324, %325 : vector<16x1xf32>
    %327 = arith.mulf %321, %321 : vector<16x1xf32>
    %328 = arith.subf %326, %327 : vector<16x1xf32>
    %329 = vector.broadcast %321 : vector<16x1xf32> to vector<16x32xf32>
    %330 = arith.subf %317, %329 : vector<16x32xf32>
    %cst_102 = arith.constant 9.99999974E-6 : f32
    %331 = vector.broadcast %cst_102 : f32 to vector<16x1xf32>
    %332 = arith.addf %328, %331 : vector<16x1xf32>
    %333 = math.rsqrt %332 : vector<16x1xf32>
    %334 = vector.broadcast %333 : vector<16x1xf32> to vector<16x32xf32>
    %335 = arith.mulf %330, %334 : vector<16x32xf32>
    %336 = vector.broadcast %12 : vector<1x32xf32> to vector<16x32xf32>
    %337 = arith.mulf %335, %336 : vector<16x32xf32>
    %338 = vector.broadcast %13 : vector<1x32xf32> to vector<16x32xf32>
    %339 = arith.addf %337, %338 : vector<16x32xf32>
    %c0_103 = arith.constant 0 : index
    %c0_104 = arith.constant 0 : index
    %340 = vector.load %arg8[%c0_103, %c0_104] : memref<16x32xf32, #tpu.memory_space<vmem>>, vector<16x32xf32>
    tpu.vector_store %arg8[%c0_103, %c0_104], %339 {strides = array<i32>} : memref<16x32xf32, #tpu.memory_space<vmem>>, vector<16x32xf32>,
    return
  }
}

</mosaic_0001>

<bundles_post_ra>
// kernel: _lambda_.1
= control target key start
LH: loop header
LB: loop body
LE: loop exit
PB: predicated region body
PF: predicated region fallthrough
CT: control target
= control target key end

     0   :  { %13 = vsyncpa [#allocation3], 0  ;;  %s4390_s0 = inlined_call_operand.hbm [shape: f32[16,32], index: 0, kind: input, shape index: {}]   ;;  %s4391_s1 = inlined_call_operand.vmem [shape: f32[16,32], index: 1, kind: input, shape index: {}]   ;;  %s4392_s2 = inlined_call_operand.hbm [shape: f32[32,32], index: 2, kind: input, shape index: {}]   ;;  %s4393_s3 = inlined_call_operand.hbm [shape: f32[32,32], index: 3, kind: input, shape index: {}]   ;;  %s4394_s4 = inlined_call_operand.hbm [shape: f32[2,32,96], index: 4, kind: input, shape index: {}]   ;;  %s4395_s5 = inlined_call_operand.hbm [shape: f32[2,32,32], index: 5, kind: input, shape index: {}]   ;;  %s4396_s6 = inlined_call_operand.vmem [shape: f32[2,96], index: 6, kind: input, shape index: {}]   ;;  %s4397_s7 = inlined_call_operand.vmem [shape: f32[8,32], index: 7, kind: input, shape index: {}]   ;;  %s4398_s8 = inlined_call_operand.hbm [shape: f32[16,32], index: 8, kind: output, shape index: {}]  }
   0x1   :  { %14 = vsyncpa [#allocation6], 0 }
   0x2   :  { %15 = vsyncpa [#allocation9], 0 }
   0x3   :  { %16 = vsyncpa [#allocation4], 0  ;;  %s3857_s27 = smov [#allocation5]   ;;  %s3858_s29 = smov [#allocation8]  }
   0x4   :  { %s36_s28 = sshll.u32 %s3857_s27, 4  ;;  %s60_s30 = sshll.u32 %s3858_s29, 4  ;;  %s37_s28 = int_to_ptr.vmem [resolvable:$true] %s36_s28  ;;  %s3922_s30 = int_to_ptr.vmem [resolvable:$true] %s60_s30 }
   0x5   :  { %s3717_s11 = scalar_lea.hbm %s4392_s2, 512 }
   0x6   :  { %p3718_p0 = scmp.ne.s32.totalorder %s4392_s2, %s3717_s11  ;;  %p3721_p1 = scmp.lt.u32.totalorder %s3717_s11, %s4392_s2 }
   0x8   :  { %p3723_p2 = pnand %p3721_p1, %p3718_p0 }
   0xa   :  { %3726 = shalt.err (!%p3723_p2)
}
   0xb   :  { %s3727_s16 = scalar_lea.vmem %s37_s28, 512  ;;  %p3732_p4 = scmp.lt.s32.totalorder %s37_s28, %s37_s28 }
   0xc   :  { %p3728_p3 = scmp.ne.s32.totalorder %s37_s28, %s3727_s16  ;;  %p3733_p5 = scmp.lt.s32.totalorder %s3727_s16, %s3727_s16 }
   0xe   :  { %p3734_p6 = por %p3733_p5, %p3732_p4 }
  0x10   :  { %p3735_p7 = pnand %p3734_p6, %p3728_p3 }
  0x12   :  { %3738 = shalt.err (!%p3735_p7)
}
  0x13   :  { %s3859_s17 = smov 128   ;;  %s3860_s18 = smov 8  }
  0x14   :  { %42 = dma.hbm_to_vmem [thread:$0]  %s4392_s2, 512, %s37_s28, [#allocation6], %s3859_s17, %s3859_s17, %s3860_s18  }
  0x15   :  { %s3739_s23 = scalar_lea.hbm %s4394_s4, 1024 }
  0x16   :  { %p3740_p8 = scmp.ne.s32.totalorder %s4394_s4, %s3739_s23  ;;  %p3743_p9 = scmp.lt.u32.totalorder %s3739_s23, %s4394_s4 }
  0x18   :  { %p3745_p10 = pnand %p3743_p9, %p3740_p8 }
  0x1a   :  { %3748 = shalt.err (!%p3745_p10)
}
  0x1b   :  { %s3749_s29 = scalar_lea.vmem %s3922_s30, 1024  ;;  %p3754_p12 = scmp.lt.s32.totalorder %s3922_s30, %s3922_s30 }
  0x1c   :  { %p3750_p11 = scmp.ne.s32.totalorder %s3922_s30, %s3749_s29  ;;  %p3755_p13 = scmp.lt.s32.totalorder %s3749_s29, %s3749_s29 }
  0x1e   :  { %p3756_p0 = por %p3755_p13, %p3754_p12 }
  0x20   :  { %p3757_p1 = pnand %p3756_p0, %p3750_p11 }
  0x22   :  { %3760 = shalt.err (!%p3757_p1)
}
  0x23   :  { %66 = dma.hbm_to_vmem [thread:$0]  %s4394_s4, 1024, %s3922_s30, [#allocation9], %s3859_s17, %s3859_s17, %s3860_s18  }
  0x24   :  { %s3861_s9 = smov [#allocation2]   ;;  %s3862_s11 = smov [#allocation7]  }
  0x25   :  { %s22_s10 = sshll.u32 %s3861_s9, 4  ;;  %s48_s12 = sshll.u32 %s3862_s11, 4  ;;  %s23_s10 = int_to_ptr.vmem [resolvable:$true] %s22_s10  ;;  %s3959_s12 = int_to_ptr.vmem [resolvable:$true] %s48_s12 }
  0x26   :  { %s3761_s15 = scalar_lea.hbm %s4390_s0, 256 }
  0x27   :  { %p3762_p2 = scmp.ne.s32.totalorder %s4390_s0, %s3761_s15  ;;  %p3765_p3 = scmp.lt.u32.totalorder %s3761_s15, %s4390_s0 }
  0x29   :  { %p3767_p4 = pnand %p3765_p3, %p3762_p2 }
  0x2b   :  { %3770 = shalt.err (!%p3767_p4)
}
  0x2c   :  { %s3771_s4 = scalar_lea.vmem %s23_s10, 256  ;;  %p3776_p6 = scmp.lt.s32.totalorder %s23_s10, %s23_s10 }
  0x2d   :  { %p3772_p5 = scmp.ne.s32.totalorder %s23_s10, %s3771_s4  ;;  %p3777_p7 = scmp.lt.s32.totalorder %s3771_s4, %s3771_s4 }
  0x2f   :  { %p3778_p8 = por %p3777_p7, %p3776_p6 }
  0x31   :  { %p3779_p9 = pnand %p3778_p8, %p3772_p5 }
  0x33   :  { %3782 = shalt.err (!%p3779_p9)
}
  0x34   :  { %28 = dma.hbm_to_vmem [thread:$0]  %s4390_s0, 256, %s23_s10, [#allocation3], %s3859_s17, %s3859_s17, %s3860_s18  }
  0x35   :  { %s3783_s25 = scalar_lea.hbm %s4393_s3, 512 }
  0x36   :  { %p3784_p10 = scmp.ne.s32.totalorder %s4393_s3, %s3783_s25  ;;  %p3787_p11 = scmp.lt.u32.totalorder %s3783_s25, %s4393_s3 }
  0x38   :  { %p3789_p12 = pnand %p3787_p11, %p3784_p10 }
  0x3a   :  { %3792 = shalt.err (!%p3789_p12)
}
  0x3b   :  { %s3793_s28 = scalar_lea.vmem %s3959_s12, 512  ;;  %p3798_p0 = scmp.lt.s32.totalorder %s3959_s12, %s3959_s12 }
  0x3c   :  { %p3794_p13 = scmp.ne.s32.totalorder %s3959_s12, %s3793_s28  ;;  %p3799_p1 = scmp.lt.s32.totalorder %s3793_s28, %s3793_s28 }
  0x3e   :  { %p3800_p2 = por %p3799_p1, %p3798_p0 }
  0x40   :  { %p3801_p3 = pnand %p3800_p2, %p3794_p13 }
  0x42   :  { %3804 = shalt.err (!%p3801_p3)
}
  0x43   :  { %54 = dma.hbm_to_vmem [thread:$0]  %s4393_s3, 512, %s3959_s12, [#allocation6], %s3859_s17, %s3859_s17, %s3860_s18  }
  0x44   :  { %s3863_s10 = smov [#allocation10]   ;;  %s3805_s15 = scalar_lea.hbm %s4395_s5, 1024 }
  0x45   :  { %s72_s11 = sshll.u32 %s3863_s10, 4  ;;  %p3806_p4 = scmp.ne.s32.totalorder %s4395_s5, %s3805_s15  ;;  %s73_s11 = int_to_ptr.vmem [resolvable:$true] %s72_s11 }
  0x46   :  { %p3809_p5 = scmp.lt.u32.totalorder %s3805_s15, %s4395_s5 }
  0x48   :  { %p3811_p6 = pnand %p3809_p5, %p3806_p4 }
  0x4a   :  { %3814 = shalt.err (!%p3811_p6)
}
  0x4b   :  { %s3815_s4 = scalar_lea.vmem %s73_s11, 1024  ;;  %p3820_p8 = scmp.lt.s32.totalorder %s73_s11, %s73_s11 }
  0x4c   :  { %p3816_p7 = scmp.ne.s32.totalorder %s73_s11, %s3815_s4  ;;  %p3821_p9 = scmp.lt.s32.totalorder %s3815_s4, %s3815_s4 }
  0x4e   :  { %p3822_p10 = por %p3821_p9, %p3820_p8 }
  0x50   :  { %p3823_p11 = pnand %p3822_p10, %p3816_p7 }
  0x52   :  { %3826 = shalt.err (!%p3823_p11)
}
  0x53   :  { %78 = dma.hbm_to_vmem [thread:$0]  %s4395_s5, 1024, %s73_s11, [#allocation9], %s3859_s17, %s3859_s17, %s3860_s18  }
  0x54   :  { %3849 = dma.done.wait [#allocation3], 256  }
  0x55   :  { %3850 = vsyncadd [#allocation3], 4294967040 }
  0x56   :  { %3851 = dma.done.wait [#allocation6], 1024  }
  0x57   :  { %3852 = vsyncadd [#allocation6], 4294966272 }
  0x58   :  { %3853 = dma.done.wait [#allocation9], 2048  }
  0x59   :  { %3854 = vsyncadd [#allocation9], 4294965248  ;;  %v159_v0 = vld [vmem:[#allocation8] sm:$0xff]  ;;  %v160_v1 = vld [vmem:[#allocation8 + $0x8] sm:$0xff]  ;;  %vm167_vm0 = vcmask 261120   ;;  %v112_v12 = vlaneseq  ;;  %vm275_vm1 = vcmask 64512  }
  0x5a   :  { %v161_v2 = vld [vmem:[#allocation8 + $0x10] sm:$0xff]  ;;  %v3353_v3 = vpack.c.bf16 %v160_v1, %v159_v0  ;;  %v162_v4 = vld [vmem:[#allocation8 + $0x18] sm:$0xff]  ;;  %s3864_s25 = smov 120   ;;  %s3866_s26 = smov 88   ;;  %vm4067_vm2 = vmpackc.low %vm275_vm1, %vm275_vm1  ;;  %v3867_v43 = vmov -1e+30  }
  0x5b   :  { %v4011_v5 = vld [vmem:[#allocation2] sm:$0xff]  ;;  %v3357_v7 = vpack.c.bf16 %v162_v4, %v161_v2  ;;  %v4021_v9 = vld [vmem:[#allocation2 + $0x8] sm:$0xff]  ;;  %v4035_v13 = vshrl.u32 %v112_v12, 7  ;;  %v140_v39 = vand.u32 127, %v112_v12  ;;  %vm359_vm5 = vcmask 130048   ;;  %s3868_s27 = smov 64  }
  0x5c   :  { %v4016_v6 = vld [vmem:[%s4391_s1] sm:$0xff]  ;;  %3354 = vmatprep.subr.bf16.mxu0 %v3353_v3  ;;  %v4026_v10 = vld [vmem:[%s4391_s1 + $0x8] sm:$0xff]  ;;  %s3869_s29 = smov 80   ;;  %s3870_s2 = smov 56   ;;  %v1612_v26 = vld [vmem:[#allocation10 + $0x28] sm:$0xff] }
  0x5d   :  { %v157_v8 = vadd.f32 %v4016_v6, %v4011_v5  ;;  %3356 = vmatpush3.bf16.msra.mxu0 %v3353_v3  ;;  %v158_v11 = vadd.f32 %v4026_v10, %v4021_v9  ;;  %v165_v14 = vsub.s32 0, %v4035_v13  ;;  %v4041_v15 = vld [vmem:[%s4396_s6] sm:$0x3]  ;;  %s3865_s6 = smov 96   ;;  %v114_v38 = vadd.s32 8, %v4035_v13  ;;  %s3871_s28 = smov 112  }
  0x5e   :  { %3358 = vmatprep.subr.bf16.mxu0 %v3357_v7  ;;  %v145_v41 = vand.u32 1, %v140_v39  ;;  %v119_v42 = vand.u32 1, %v4035_v13  ;;  %s3872_s0 = smov 104   ;;  %s3873_s9 = smov 72  }
  0x5f   :  { %3140 = vmatprep.mubr.msk.f32.mxu0 %vm167_vm0, %v157_v8  ;;  %v166_v16 = vrot.slane %v4041_v15, %v165_v14  ;;  %v126_v40 = vand.u32 1, %v114_v38  ;;  %s3874_s10 = smov 48   ;;  %s3875_s11 = smov 40  }
  0x60   :  { %vm153_vm4 = vcmp.eq.s32.totalorder %v119_v42, %v145_v41 }
  0x61   :  { %3360 = vmatpush3.bf16.msra.mxu0 %v3357_v7  ;;  %vm154_vm3 = vcmp.eq.s32.totalorder %v126_v40, %v145_v41  ;;  %v4088_v45 = vsel %vm153_vm4, 0.0, %v3867_v43 }
  0x62   :  { %v4086_v44 = vsel %vm154_vm3, 0.0, %v3867_v43 }
  0x64   :  { %3141 = vmatmul.mubr.msk.f32.vlgmr.msra.gmra.mrb[0].mxu0 %vm167_vm0, %v158_v11 }
  0x65   :  { %3143 = vmatprep.mubr.msk.f32.mxu0 %vm167_vm0, %v4011_v5 }
  0x68   :  { %3144 = vmatmul.mubr.msk.f32.gmra.mrb[2].mxu0 %vm167_vm0, %v4021_v9 }
 0x137   :  { %v3142_v17 = vpop.f32.mrb[0].mxu0 }
 0x138   :  { %v4046_v18 = vadd.f32 %v3142_v17, %v166_v16  ;;  %v246_v19 = vpop.f32.mrb[1].mxu0 }
 0x139   :  { %v4048_v20 = vadd.f32 %v246_v19, %v166_v16 }
 0x13b   :  { %471 = vrot.lane.b32.xlu1 %v4048_v20, %s3864_s25  ;;  %3150 = vmatprep.mubr.msk.f32.mxu1 %vm275_vm1, %v4048_v20  ;;  %v4056_v21 = vpack.i.bf16 %v4046_v18, %v4048_v20  ;;  %v3145_v33 = vpop.f32.mrb[2].mxu0 }
 0x13c   :  { %v256_v34 = vpop.f32.mrb[3].mxu0  ;;  %v262_v35 = vadd.f32 %v3145_v33, %v166_v16 }
 0x13d   :  { %3522 = vrot.lane.b32.xlu0 %v4056_v21, %s3865_s6  ;;  %v257_v36 = vadd.f32 %v256_v34, %v166_v16 }
 0x13f   :  { %473 = vrot.lane.b32.xlu1 %v4046_v18, %s3864_s25  ;;  %v4082_v37 = vpack.i.bf16 %v262_v35, %v257_v36 }
 0x141   :  { %3527 = vrot.lane.b32.xlu0 %v4056_v21, %s3866_s26 }
 0x1ad   :  { %v472_v22 = vpop.permute.xlu1 %471 }
 0x1ae   :  { %3164 = vmatprep.mubr.msk.f32.mxu0 %vm275_vm1, %v472_v22 }
 0x1af   :  { %v3523_v23 = vpop.permute.xlu0 %3522 }
 0x1b0   :  { %v3525_v24 = vunpack.i.h.bf16 %v3523_v23  ;;  %v3524_v25 = vunpack.i.l.bf16 %v3523_v23 }
 0x1b1   :  { %v474_v32 = vpop.permute.xlu1 %473 }
 0x1b2   :  { %v3361_v27 = vpack.c.bf16 %v3525_v24, %v3524_v25 }
 0x1b3   :  { %v3528_v28 = vpop.permute.xlu0 %3527 }
 0x1b4   :  { %v3530_v29 = vunpack.i.h.bf16 %v3528_v28  ;;  %v3529_v30 = vunpack.i.l.bf16 %v3528_v28  ;;  %3363 = vmatprep.subr.msk.bf16.mxu1 %vm4067_vm2, %v3361_v27 }
 0x1b5   :  { %3366 = vmatpush3.bf16.xpose.msk.msra.mxu1 %vm4067_vm2, %v3361_v27 }
 0x1b6   :  { %v3371_v31 = vpack.c.bf16 %v3530_v29, %v3529_v30 }
 0x1b8   :  { %3373 = vmatprep.subr.msk.bf16.mxu0 %vm4067_vm2, %v3371_v31 }
 0x1b9   :  { %3376 = vmatpush3.bf16.xpose.msk.msra.mxu0 %vm4067_vm2, %v3371_v31 }
 0x1bc   :  { %3151 = vmatmul.mubr.msk.f32.vlgmr.msra.gmra.mrb[0].mxu1 %vm275_vm1, %v4046_v18 }
 0x1c0   :  { %3165 = vmatmul.mubr.msk.f32.vlgmr.msra.gmra.mrb[4].mxu0 %vm275_vm1, %v474_v32 }
 0x28f   :  { %v3152_v46 = vpop.f32.mrb[0].mxu1 }
 0x290   :  { %v356_v47 = vadd.f32 %v3152_v46, %v4086_v44  ;;  %v350_v48 = vpop.f32.mrb[1].mxu1 }
 0x291   :  { %v351_v49 = vadd.f32 %v350_v48, %v4088_v45 }
 0x292   :  { %v363_v50 = vsel %vm359_vm5, %v356_v47, -inf }
 0x293   :  { %v3166_v51 = vpop.f32.mrb[4].mxu0  ;;  %364 = vmax.xlane.f32.xlu1 %v363_v50  ;;  %v360_v52 = vsel %vm359_vm5, %v351_v49, -inf }
 0x294   :  { %v553_v53 = vpop.f32.mrb[5].mxu0  ;;  %361 = vmax.xlane.f32.xlu0 %v360_v52  ;;  %v559_v55 = vadd.f32 %v3166_v51, %v4086_v44 }
 0x295   :  { %v554_v54 = vadd.f32 %v553_v53, %v4088_v45 }
 0x296   :  { %v565_v57 = vsel %vm359_vm5, %v559_v55, -inf }
 0x297   :  { %v562_v56 = vsel %vm359_vm5, %v554_v54, -inf }
 0x298   :  { %563 = vmax.xlane.f32.xlu0 %v562_v56 }
 0x29c   :  { %566 = vmax.xlane.f32.xlu0 %v565_v57  ;;  %v266_v57 = vld [vmem:[#allocation10 + $0x8] sm:$0xff] }
 0x29d   :  { %3174 = vmatprep.subr.mxu0 %v266_v57 }
 0x29e   :  { %3175 = vmatpush3.msra.mxu0 %v266_v57 }
 0x2a4   :  { %3532 = vrot.lane.b32.xlu1 %v4082_v37, %s3868_s27 }
 0x320   :  { %v365_v58 = vpop.xlane.xlu1 %364 }
 0x321   :  { %v367_v59 = vsub.f32 %v356_v47, %v365_v58  ;;  %v362_v60 = vpop.xlane.xlu0 %361  ;;  %v265_v58 = vld [vmem:[#allocation10] sm:$0xff] }
 0x322   :  { %v366_v61 = vsub.f32 %v351_v49, %v362_v60  ;;  %3179 = vmatprep.subr.mxu0 %v265_v58 }
 0x323   :  { %v370_v62 = vmul.f32 1.442695, %v367_v59 }
 0x324   :  { %v368_v63 = vmul.f32 1.442695, %v366_v61  ;;  %v3533_v0 = vpop.permute.xlu1 %3532 }
 0x325   :  { %3641 = vpow2.f32 %v370_v62  ;;  %v564_v1 = vpop.xlane.xlu0 %563  ;;  %v3535_v2 = vunpack.i.h.bf16 %v3533_v0  ;;  %v3534_v3 = vunpack.i.l.bf16 %v3533_v0 }
 0x326   :  { %3643 = vpow2.f32 %v368_v63  ;;  %v568_v24 = vsub.f32 %v554_v54, %v564_v1 }
 0x327   :  { %v3367_v4 = vpack.c.bf16 %v3535_v2, %v3534_v3 }
 0x328   :  { %v570_v25 = vmul.f32 1.442695, %v568_v24 }
 0x329   :  { %v567_v7 = vpop.xlane.xlu0 %566  ;;  %3368 = vmatprep.subr.bf16.mxu1 %v3367_v4 }
 0x32a   :  { %v569_v8 = vsub.f32 %v559_v55, %v567_v7  ;;  %3370 = vmatpush3.bf16.msra.mxu1 %v3367_v4 }
 0x32c   :  { %v572_v11 = vmul.f32 1.442695, %v569_v8 }
 0x32e   :  { %3645 = vpow2.f32 %v572_v11 }
 0x32f   :  { %v3642_v12 = vpop.eup %3641  ;;  %3647 = vpow2.f32 %v570_v25 }
 0x330   :  { %v3644_v16 = vpop.eup %3643  ;;  %v375_v17 = vsel %vm359_vm5, %v3642_v12, 0.0 }
 0x331   :  { %376 = vadd.xlane.f32.xlu0 %v375_v17  ;;  %v372_v19 = vsel %vm359_vm5, %v3644_v16, 0.0 }
 0x332   :  { %373 = vadd.xlane.f32.xlu1 %v372_v19 }
 0x338   :  { %v3646_v22 = vpop.eup %3645 }
 0x339   :  { %v577_v23 = vsel %vm359_vm5, %v3646_v22, 0.0  ;;  %v3648_v27 = vpop.eup %3647 }
 0x33a   :  { %578 = vadd.xlane.f32.xlu0 %v577_v23  ;;  %v574_v28 = vsel %vm359_vm5, %v3648_v27, 0.0 }
 0x343   :  { %3542 = vrot.lane.b32.xlu1 %v4056_v21, %s3869_s29 }
 0x350   :  { %3537 = vrot.lane.b32.xlu0 %v4082_v37, %s3870_s2 }
 0x354   :  { %835 = vrot.lane.b32.xlu0 %v4046_v18, %s3871_s28 }
 0x358   :  { %1116 = vrot.lane.b32.xlu0 %v4048_v20, %s3872_s0 }
 0x367   :  { %575 = vadd.xlane.f32.xlu1 %v574_v28 }
 0x378   :  { %833 = vrot.lane.b32.xlu1 %v4048_v20, %s3871_s28 }
 0x37c   :  { %3547 = vrot.lane.b32.xlu1 %v4056_v21, %s3873_s9 }
 0x380   :  { %1118 = vrot.lane.b32.xlu1 %v4046_v18, %s3872_s0 }
 0x3be   :  { %v377_v29 = vpop.xlane.xlu0 %376 }
 0x3bf   :  { %3649 = vrcp.f32 %v377_v29  ;;  %v374_v30 = vpop.xlane.xlu1 %373 }
 0x3c0   :  { %3651 = vrcp.f32 %v374_v30 }
 0x3c3   :  { %v3543_v32 = vpop.permute.xlu1 %3542 }
 0x3c4   :  { %v3545_v35 = vunpack.i.h.bf16 %v3543_v32  ;;  %v3544_v20 = vunpack.i.l.bf16 %v3543_v32 }
 0x3c6   :  { %v3381_v18 = vpack.c.bf16 %v3545_v35, %v3544_v20  ;;  %v267_v35 = vld [vmem:[#allocation10 + $0x10] sm:$0xff] }
 0x3c7   :  { %v579_v31 = vpop.xlane.xlu0 %578 }
 0x3c8   :  { %3653 = vrcp.f32 %v579_v31 }
 0x3c9   :  { %v3650_v33 = vpop.eup %3649 }
 0x3ca   :  { %v3652_v34 = vpop.eup %3651  ;;  %v381_v39 = vmul.f32 %v3650_v33, %v3642_v12 }
 0x3cb   :  { %v3538_v36 = vpop.permute.xlu0 %3537  ;;  %v380_v38 = vmul.f32 %v3652_v34, %v3644_v16 }
 0x3cc   :  { %v3540_v40 = vunpack.i.h.bf16 %v3538_v36  ;;  %v3539_v41 = vunpack.i.l.bf16 %v3538_v36 }
 0x3cd   :  { %3157 = vmatprep.mubr.msk.f32.mxu1 %vm359_vm5, %v380_v38 }
 0x3ce   :  { %v3377_v21 = vpack.c.bf16 %v3540_v40, %v3539_v41  ;;  %3158 = vmatmul.mubr.msk.f32.vlgmr.msra.gmra.mrb[2].mxu1 %vm359_vm5, %v381_v39 }
 0x3cf   :  { %v836_v54 = vpop.permute.xlu0 %835 }
 0x3d0   :  { %3378 = vmatprep.subr.bf16.mxu1 %v3377_v21 }
 0x3d1   :  { %3380 = vmatpush3.bf16.msra.mxu1 %v3377_v21 }
 0x3d2   :  { %3383 = vmatprep.subr.msk.bf16.mxu1 %vm4067_vm2, %v3381_v18  ;;  %v3654_v47 = vpop.eup %3653 }
 0x3d3   :  { %v583_v52 = vmul.f32 %v3654_v47, %v3646_v22  ;;  %v1117_v55 = vpop.permute.xlu0 %1116 }
 0x3f4   :  { %v576_v42 = vpop.xlane.xlu1 %575 }
 0x3f5   :  { %3655 = vrcp.f32 %v576_v42 }
 0x3f8   :  { %v834_v43 = vpop.permute.xlu1 %833 }
 0x3fc   :  { %v3548_v46 = vpop.permute.xlu1 %3547 }
 0x3fd   :  { %v3550_v49 = vunpack.i.h.bf16 %v3548_v46  ;;  %v3549_v50 = vunpack.i.l.bf16 %v3548_v46 }
 0x3ff   :  { %v3656_v48 = vpop.eup %3655  ;;  %v3391_v53 = vpack.c.bf16 %v3550_v49, %v3549_v50 }
 0x400   :  { %v582_v51 = vmul.f32 %v3656_v48, %v3648_v27  ;;  %v1119_v56 = vpop.permute.xlu1 %1118 }
 0x402   :  { %3171 = vmatprep.mubr.msk.f32.mxu1 %vm359_vm5, %v582_v51 }
 0x403   :  { %3172 = vmatmul.mubr.msk.f32.vlgmr.msra.gmra.mrb[4].mxu1 %vm359_vm5, %v583_v52 }
 0x404   :  { %3386 = vmatpush3.bf16.xpose.msk.msra.mxu1 %vm4067_vm2, %v3381_v18  ;;  %3188 = vmatprep.mubr.msk.f32.mxu1 %vm275_vm1, %v834_v43 }
 0x405   :  { %3393 = vmatprep.subr.msk.bf16.mxu1 %vm4067_vm2, %v3391_v53 }
 0x40b   :  { %3189 = vmatmul.mubr.msk.f32.vlgmr.msra.gmra.mrb[6].mxu1 %vm275_vm1, %v836_v54 }
 0x40c   :  { %3396 = vmatpush3.bf16.xpose.msk.msra.mxu1 %vm4067_vm2, %v3391_v53  ;;  %3207 = vmatprep.mubr.msk.f32.mxu1 %vm275_vm1, %v1117_v55 }
 0x413   :  { %3208 = vmatmul.mubr.msk.f32.vlgmr.msra.gmra.mrb[8].mxu1 %vm275_vm1, %v1119_v56 }
 0x4a1   :  { %v3159_v59 = vpop.f32.mrb[2].mxu1 }
 0x4a2   :  { %v462_v60 = vpop.f32.mrb[3].mxu1 }
 0x4d6   :  { %v3173_v61 = vpop.f32.mrb[4].mxu1 }
 0x4d7   :  { %v662_v62 = vpop.f32.mrb[5].mxu1 }
 0x4d8   :  { %3176 = vmatprep.mubr.msk.f32.mxu0 %vm275_vm1, %v662_v62 }
 0x4d9   :  { %3177 = vmatmul.mubr.msk.f32.vlgmr.msra.gmra.mrb[6].mxu0 %vm275_vm1, %v3173_v61 }
 0x4da   :  { %3181 = vmatprep.mubr.msk.f32.mxu0 %vm275_vm1, %v462_v60  ;;  %3180 = vmatpush3.msra.mxu0 %v265_v58 }
 0x4de   :  { %v3190_v63 = vpop.f32.mrb[6].mxu1 }
 0x4df   :  { %v921_v0 = vadd.f32 %v3190_v63, %v4086_v44  ;;  %v915_v1 = vpop.f32.mrb[7].mxu1  ;;  %v268_v63 = vld [vmem:[#allocation10 + $0x18] sm:$0xff] }
 0x4e0   :  { %v916_v2 = vadd.f32 %v915_v1, %v4088_v45 }
 0x4e1   :  { %v927_v3 = vsel %vm359_vm5, %v921_v0, -inf  ;;  %3182 = vmatmul.mubr.msk.f32.vlgmr.msra.gmra.mrb[6].mxu0 %vm275_vm1, %v3159_v59 }
 0x4e2   :  { %928 = vmax.xlane.f32.xlu1 %v927_v3  ;;  %v924_v4 = vsel %vm359_vm5, %v916_v2, -inf  ;;  %v4165_v3 = vld [vmem:[%s4397_s7] sm:$0xff]  ;;  %s3876_s7 = smov [#allocation11]  }
 0x4e3   :  { %925 = vmax.xlane.f32.xlu0 %v924_v4  ;;  %v1402_v4 = vrot.slane %v4165_v3, %v165_v14  ;;  %s2906_s15 = sshll.u32 %s3876_s7, 4  ;;  %s2907_s15 = int_to_ptr.vmem [resolvable:$true] %s2906_s15 }
 0x4e4   :  { %s3827_s16 = scalar_lea.vmem %s2907_s15, 256  ;;  %p3832_p13 = scmp.lt.s32.totalorder %s2907_s15, %s2907_s15 }
 0x4e5   :  { %p3828_p12 = scmp.ne.s32.totalorder %s2907_s15, %s3827_s16  ;;  %p3833_p0 = scmp.lt.s32.totalorder %s3827_s16, %s3827_s16 }
 0x4e6   :  { %v3209_v7 = vpop.f32.mrb[8].mxu1 }
 0x4e7   :  { %v1198_v8 = vpop.f32.mrb[9].mxu1  ;;  %v1204_v32 = vadd.f32 %v3209_v7, %v4086_v44  ;;  %p3834_p1 = por %p3833_p0, %p3832_p13 }
 0x4e9   :  { %v1210_v34 = vsel %vm359_vm5, %v1204_v32, -inf  ;;  %p3835_p2 = pnand %p3834_p1, %p3828_p12 }
 0x4f3   :  { %3552 = vrot.lane.b32.xlu1 %v4082_v37, %s3874_s10 }
 0x4f7   :  { %3557 = vrot.lane.b32.xlu1 %v4082_v37, %s3875_s11  ;;  %v1199_v37 = vadd.f32 %v1198_v8, %v4088_v45 }
 0x4f9   :  { %v1207_v33 = vsel %vm359_vm5, %v1199_v37, -inf }
 0x56f   :  { %v929_v11 = vpop.xlane.xlu1 %928 }
 0x570   :  { %v931_v12 = vsub.f32 %v921_v0, %v929_v11  ;;  %v926_v16 = vpop.xlane.xlu0 %925 }
 0x571   :  { %v930_v17 = vsub.f32 %v916_v2, %v926_v16 }
 0x572   :  { %v934_v19 = vmul.f32 1.442695, %v931_v12 }
 0x573   :  { %v932_v22 = vmul.f32 1.442695, %v930_v17  ;;  %v3553_v23 = vpop.permute.xlu1 %3552 }
 0x574   :  { %v3555_v24 = vunpack.i.h.bf16 %v3553_v23  ;;  %v3554_v25 = vunpack.i.l.bf16 %v3553_v23 }
 0x575   :  { %3657 = vpow2.f32 %v932_v22 }
 0x576   :  { %v3387_v27 = vpack.c.bf16 %v3555_v24, %v3554_v25  ;;  %3659 = vpow2.f32 %v934_v19 }
 0x577   :  { %v3558_v41 = vpop.permute.xlu1 %3557 }
 0x578   :  { %3388 = vmatprep.subr.bf16.mxu0 %v3387_v27  ;;  %v3560_v46 = vunpack.i.h.bf16 %v3558_v41  ;;  %v3559_v47 = vunpack.i.l.bf16 %v3558_v41 }
 0x579   :  { %3390 = vmatpush3.bf16.msra.mxu0 %v3387_v27  ;;  %v1457_v27 = vld [vmem:[#allocation8 + $0x20] sm:$0xff] }
 0x57a   :  { %3198 = vmatprep.subr.mxu0 %v267_v35  ;;  %v3397_v51 = vpack.c.bf16 %v3560_v46, %v3559_v47 }
 0x57f   :  { %v3658_v28 = vpop.eup %3657 }
 0x580   :  { %v936_v29 = vsel %vm359_vm5, %v3658_v28, 0.0  ;;  %v3660_v30 = vpop.eup %3659 }
 0x581   :  { %937 = vadd.xlane.f32.xlu0 %v936_v29  ;;  %v939_v31 = vsel %vm359_vm5, %v3660_v30, 0.0 }
 0x585   :  { %940 = vadd.xlane.f32.xlu0 %v939_v31 }
 0x589   :  { %1208 = vmax.xlane.f32.xlu0 %v1207_v33 }
 0x58d   :  { %1211 = vmax.xlane.f32.xlu0 %v1210_v34 }
 0x60e   :  { %v938_v36 = vpop.xlane.xlu0 %937 }
 0x60f   :  { %3661 = vrcp.f32 %v938_v36 }
 0x612   :  { %v941_v38 = vpop.xlane.xlu0 %940 }
 0x613   :  { %3663 = vrcp.f32 %v941_v38 }
 0x616   :  { %v1209_v39 = vpop.xlane.xlu0 %1208 }
 0x617   :  { %v1213_v20 = vsub.f32 %v1199_v37, %v1209_v39 }
 0x619   :  { %v3662_v40 = vpop.eup %3661  ;;  %v1215_v21 = vmul.f32 1.442695, %v1213_v20 }
 0x61a   :  { %v1212_v18 = vpop.xlane.xlu0 %1211  ;;  %v944_v42 = vmul.f32 %v3662_v40, %v3658_v28  ;;  %v1458_v28 = vld [vmem:[#allocation8 + $0x28] sm:$0xff] }
 0x61b   :  { %3665 = vpow2.f32 %v1215_v21  ;;  %v1214_v43 = vsub.f32 %v1204_v32, %v1212_v18  ;;  %v3401_v29 = vpack.c.bf16 %v1458_v28, %v1457_v27 }
 0x61c   :  { %3195 = vmatprep.mubr.msk.f32.mxu0 %vm359_vm5, %v944_v42  ;;  %v1440_v42 = vsub.s32 2, %v4035_v13 }
 0x61d   :  { %v3664_v48 = vpop.eup %3663  ;;  %v1217_v49 = vmul.f32 1.442695, %v1214_v43  ;;  %3402 = vmatprep.subr.bf16.mxu1 %v3401_v29  ;;  %v1446_v43 = vsub.s32 3, %v4035_v13 }
 0x61e   :  { %v945_v50 = vmul.f32 %v3664_v48, %v3660_v30  ;;  %v1460_v30 = vld [vmem:[#allocation8 + $0x38] sm:$0xff]  ;;  %3404 = vmatpush3.bf16.msra.mxu1 %v3401_v29  ;;  %v1441_v47 = vrot.slane %v4165_v3, %v1440_v42 }
 0x61f   :  { %3667 = vpow2.f32 %v1217_v49 }
 0x620   :  { %3196 = vmatmul.mubr.msk.f32.vlgmr.msra.gmra.mrb[8].mxu0 %vm359_vm5, %v945_v50  ;;  %v1447_v50 = vrot.slane %v4165_v3, %v1446_v43 }
 0x621   :  { %3199 = vmatpush3.msra.mxu0 %v267_v35 }
 0x622   :  { %3398 = vmatprep.subr.bf16.mxu0 %v3397_v51 }
 0x625   :  { %v3666_v52 = vpop.eup %3665 }
 0x626   :  { %v1219_v53 = vsel %vm359_vm5, %v3666_v52, 0.0 }
 0x627   :  { %1220 = vadd.xlane.f32.xlu0 %v1219_v53 }
 0x629   :  { %v3668_v54 = vpop.eup %3667 }
 0x62a   :  { %v1222_v55 = vsel %vm359_vm5, %v3668_v54, 0.0 }
 0x62b   :  { %1223 = vadd.xlane.f32.xlu0 %v1222_v55 }
 0x6b4   :  { %v1221_v56 = vpop.xlane.xlu0 %1220 }
 0x6b5   :  { %3669 = vrcp.f32 %v1221_v56 }
 0x6b8   :  { %v1224_v57 = vpop.xlane.xlu0 %1223 }
 0x6b9   :  { %3671 = vrcp.f32 %v1224_v57 }
 0x6bf   :  { %v3670_v58 = vpop.eup %3669 }
 0x6c0   :  { %v1227_v62 = vmul.f32 %v3670_v58, %v3666_v52  ;;  %v100_v58 = vld [vmem:[#allocation5] sm:$0xff] }
 0x6c3   :  { %v3672_v61 = vpop.eup %3671 }
 0x6c4   :  { %v1228_v0 = vmul.f32 %v3672_v61, %v3668_v54 }
 0x6f3   :  { %v3197_v59 = vpop.f32.mrb[8].mxu0 }
 0x6f4   :  { %v1024_v60 = vpop.f32.mrb[9].mxu0 }
 0x6f5   :  { %3200 = vmatprep.mubr.msk.f32.mxu0 %vm275_vm1, %v1024_v60 }
 0x6f6   :  { %3201 = vmatmul.mubr.msk.f32.vlgmr.msra.gmra.mrb[6].mxu0 %vm275_vm1, %v3197_v59  ;;  %v106_v59 = vld [vmem:[#allocation7] sm:$0xff] }
 0x6f7   :  { %3400 = vmatpush3.bf16.msra.mxu0 %v3397_v51  ;;  %3214 = vmatprep.mubr.msk.f32.mxu0 %vm359_vm5, %v1227_v62  ;;  %v1452_v61 = vadd.f32 %v106_v59, %v100_v58  ;;  %v101_v62 = vld [vmem:[#allocation5 + $0x8] sm:$0xff] }
 0x6f8   :  { %3217 = vmatprep.subr.mxu0 %v268_v63 }
 0x6fa   :  { %3215 = vmatmul.mubr.msk.f32.vlgmr.msra.gmra.mrb[10].mxu0 %vm359_vm5, %v1228_v0 }
 0x6fb   :  { %3218 = vmatpush3.msra.mxu0 %v268_v63  ;;  %v107_v63 = vld [vmem:[#allocation7 + $0x8] sm:$0xff] }
 0x7cd   :  { %v3216_v1 = vpop.f32.mrb[10].mxu0 }
 0x7ce   :  { %v1307_v2 = vpop.f32.mrb[11].mxu0 }
 0x7cf   :  { %3219 = vmatprep.mubr.msk.f32.mxu0 %vm275_vm1, %v1307_v2  ;;  %v108_v2 = vld [vmem:[#allocation7 + $0x10] sm:$0xff] }
 0x7d0   :  { %3220 = vmatmul.mubr.msk.f32.vlgmr.msra.gmra.mrb[6].mxu0 %vm275_vm1, %v3216_v1  ;;  %v102_v1 = vld [vmem:[#allocation5 + $0x10] sm:$0xff] }
 0x8a3   :  { %v3221_v7 = vpop.f32.mrb[6].mxu0 }
 0x8a4   :  { %v1404_v8 = vadd.f32 %v3221_v7, %v1402_v4  ;;  %v1388_v11 = vpop.f32.mrb[7].mxu0  ;;  %v103_v7 = vld [vmem:[#allocation5 + $0x18] sm:$0xff] }
 0x8a5   :  { %v1403_v12 = vadd.f32 %v1402_v4, %v1388_v11  ;;  %v1453_v4 = vadd.f32 %v107_v63, %v101_v62 }
 0x8a6   :  { %v1406_v16 = vadd.f32 %v1404_v8, %v4021_v9  ;;  %v1459_v9 = vld [vmem:[#allocation8 + $0x30] sm:$0xff]  ;;  %v109_v8 = vld [vmem:[#allocation7 + $0x18] sm:$0xff] }
 0x8a7   :  { %v1405_v17 = vadd.f32 %v1403_v12, %v4011_v5  ;;  %v3405_v5 = vpack.c.bf16 %v1460_v30, %v1459_v9  ;;  %v1455_v11 = vadd.f32 %v109_v8, %v103_v7 }
 0x8a8   :  { %v1410_v19 = vsel %vm167_vm0, %v1406_v16, 0.0  ;;  %v1417_v25 = vmul.f32 %v1406_v16, %v1406_v16 }
 0x8a9   :  { %1411 = vadd.xlane.f32.xlu1 %v1410_v19  ;;  %v1407_v22 = vsel %vm167_vm0, %v1405_v17, 0.0  ;;  %v1416_v23 = vmul.f32 %v1405_v17, %v1405_v17  ;;  %3406 = vmatprep.subr.bf16.mxu1 %v3405_v5 }
 0x8aa   :  { %1408 = vadd.xlane.f32.xlu0 %v1407_v22  ;;  %v1421_v14 = vsel %vm167_vm0, %v1417_v25, 0.0  ;;  %3408 = vmatpush3.bf16.msra.mxu1 %v3405_v5 }
 0x8ab   :  { %v1418_v24 = vsel %vm167_vm0, %v1416_v23, 0.0 }
 0x8ae   :  { %1419 = vadd.xlane.f32.xlu0 %v1418_v24 }
 0x8b2   :  { %1422 = vadd.xlane.f32.xlu0 %v1421_v14 }
 0x936   :  { %v1412_v32 = vpop.xlane.xlu1 %1411 }
 0x937   :  { %v1409_v37 = vpop.xlane.xlu0 %1408  ;;  %v1415_v34 = vmul.f32 0.03125, %v1412_v32 }
 0x938   :  { %v1414_v31 = vmul.f32 0.03125, %v1409_v37 }
 0x939   :  { %v1427_v20 = vmul.f32 %v1415_v34, %v1415_v34  ;;  %v1431_v51 = vsub.f32 %v1406_v16, %v1415_v34 }
 0x93a   :  { %v1426_v35 = vmul.f32 %v1414_v31, %v1414_v31  ;;  %v1430_v46 = vsub.f32 %v1405_v17, %v1414_v31 }
 0x93b   :  { %v1420_v33 = vpop.xlane.xlu0 %1419 }
 0x93c   :  { %v1424_v36 = vmul.f32 0.03125, %v1420_v33 }
 0x93e   :  { %v1428_v38 = vsub.f32 %v1424_v36, %v1426_v35 }
 0x93f   :  { %v1423_v39 = vpop.xlane.xlu0 %1422 }
 0x940   :  { %v1432_v40 = vadd.f32 1e-05, %v1428_v38  ;;  %v1425_v41 = vmul.f32 0.03125, %v1423_v39 }
 0x942   :  { %3673 = vrsqrt.f32 %v1432_v40  ;;  %v1429_v21 = vsub.f32 %v1425_v41, %v1427_v20 }
 0x944   :  { %v1433_v18 = vadd.f32 1e-05, %v1429_v21 }
 0x946   :  { %3675 = vrsqrt.f32 %v1433_v18 }
 0x94c   :  { %v3674_v48 = vpop.eup %3673 }
 0x94d   :  { %v1436_v49 = vmul.f32 %v3674_v48, %v1430_v46 }
 0x94f   :  { %v1442_v52 = vmul.f32 %v1441_v47, %v1436_v49 }
 0x950   :  { %v3676_v53 = vpop.eup %3675 }
 0x951   :  { %v1437_v54 = vmul.f32 %v3676_v53, %v1431_v51  ;;  %v4180_v55 = vadd.f32 %v1447_v50, %v1442_v52 }
 0x953   :  { %v1443_v56 = vmul.f32 %v1441_v47, %v1437_v54  ;;  %v1450_v57 = vadd.f32 %v4180_v55, %v4016_v6  ;;  %v1454_v6 = vadd.f32 %v108_v2, %v102_v1 }
 0x955   :  { %v4184_v60 = vadd.f32 %v1447_v50, %v1443_v56  ;;  %3230 = vmatprep.mubr.msk.f32.mxu1 %vm167_vm0, %v1450_v57 }
 0x957   :  { %v1451_v0 = vadd.f32 %v4184_v60, %v4026_v10  ;;  %v1463_v10 = vsub.s32 1, %v4035_v13 }
 0x959   :  { %3231 = vmatmul.mubr.msk.f32.vlgmr.msra.gmra.mrb[10].mxu1 %vm167_vm0, %v1451_v0  ;;  %v4202_v12 = vrot.slane %v4041_v15, %v1463_v10 }
 0x95a   :  { %3233 = vmatprep.mubr.msk.f32.mxu1 %vm167_vm0, %v1452_v61 }
 0x95d   :  { %3234 = vmatmul.mubr.msk.f32.gmra.mrb[12].mxu1 %vm167_vm0, %v1453_v4 }
 0x95e   :  { %3236 = vmatprep.mubr.msk.f32.mxu1 %vm167_vm0, %v1454_v6 }
 0x961   :  { %3237 = vmatmul.mubr.msk.f32.gmra.mrb[14].mxu1 %vm167_vm0, %v1455_v11 }
 0x962   :  { %3239 = vmatprep.mubr.msk.f32.mxu1 %vm167_vm0, %v100_v58 }
 0x965   :  { %3240 = vmatmul.mubr.msk.f32.gmra.mrb[16].mxu1 %vm167_vm0, %v101_v62 }
 0x966   :  { %3242 = vmatprep.mubr.msk.f32.mxu1 %vm167_vm0, %v102_v1 }
 0x969   :  { %3243 = vmatmul.mubr.msk.f32.gmra.mrb[18].mxu1 %vm167_vm0, %v103_v7 }
 0xa2c   :  { %v3232_v16 = vpop.f32.mrb[10].mxu1 }
 0xa2d   :  { %v1561_v17 = vpop.f32.mrb[11].mxu1  ;;  %v4230_v30 = vadd.f32 %v3232_v16, %v4202_v12 }
 0xa2e   :  { %v4205_v19 = vadd.f32 %v1561_v17, %v4202_v12 }
 0xa30   :  { %v3235_v22 = vpop.f32.mrb[12].mxu1  ;;  %3253 = vmatprep.mubr.msk.f32.mxu0 %vm275_vm1, %v4205_v19 }
 0xa31   :  { %v1577_v23 = vadd.f32 %v3235_v22, %v4202_v12  ;;  %v1571_v24 = vpop.f32.mrb[13].mxu1 }
 0xa32   :  { %v1572_v25 = vadd.f32 %v1571_v24, %v4202_v12 }
 0xa34   :  { %v3238_v14 = vpop.f32.mrb[14].mxu1  ;;  %v4211_v27 = vpack.i.bf16 %v1577_v23, %v1572_v25 }
 0xa35   :  { %v1587_v15 = vadd.f32 %v3238_v14, %v4202_v12  ;;  %v1581_v28 = vpop.f32.mrb[15].mxu1 }
 0xa36   :  { %v1582_v29 = vadd.f32 %v1581_v28, %v4202_v12  ;;  %3562 = vrot.lane.b32.xlu0 %v4211_v27, %s3865_s6 }
 0xa38   :  { %v4217_v9 = vpack.i.bf16 %v1587_v15, %v1582_v29  ;;  %v3241_v58 = vpop.f32.mrb[16].mxu1 }
 0xa39   :  { %v1591_v59 = vpop.f32.mrb[17].mxu1  ;;  %v1597_v28 = vadd.f32 %v3241_v58, %v4202_v12 }
 0xa3a   :  { %3577 = vrot.lane.b32.xlu1 %v4217_v9, %s3866_s26  ;;  %3567 = vrot.lane.b32.xlu0 %v4217_v9, %s3865_s6  ;;  %v1592_v29 = vadd.f32 %v1591_v59, %v4202_v12 }
 0xa3c   :  { %v3244_v61 = vpop.f32.mrb[18].mxu1 }
 0xa3d   :  { %v1601_v62 = vpop.f32.mrb[19].mxu1  ;;  %v1607_v23 = vadd.f32 %v3244_v61, %v4202_v12 }
 0xa3e   :  { %3572 = vrot.lane.b32.xlu0 %v4211_v27, %s3866_s26  ;;  %2211 = vrot.lane.b32.xlu1 %v4205_v19, %s3871_s28  ;;  %v1602_v24 = vadd.f32 %v1601_v62, %v4202_v12 }
 0xa40   :  { %v4280_v15 = vpack.i.bf16 %v1607_v23, %v1602_v24 }
 0xa42   :  { %1835 = vrot.lane.b32.xlu0 %v4205_v19, %s3864_s25 }
 0xa46   :  { %1837 = vrot.lane.b32.xlu0 %v4230_v30, %s3864_s25 }
 0xa4a   :  { %3582 = vrot.lane.b32.xlu0 %v4211_v27, %s3869_s29 }
 0xa4e   :  { %3587 = vrot.lane.b32.xlu0 %v4217_v9, %s3869_s29 }
 0xa52   :  { %2213 = vrot.lane.b32.xlu0 %v4230_v30, %s3871_s28 }
 0xaa8   :  { %v3563_v5 = vpop.permute.xlu0 %3562 }
 0xaa9   :  { %v3565_v37 = vunpack.i.h.bf16 %v3563_v5  ;;  %v3564_v31 = vunpack.i.l.bf16 %v3563_v5  ;;  %v4286_v5 = vpack.i.bf16 %v1597_v28, %v1592_v29 }
 0xaab   :  { %v3409_v32 = vpack.c.bf16 %v3565_v37, %v3564_v31 }
 0xaac   :  { %v3568_v33 = vpop.permute.xlu0 %3567  ;;  %v3578_v21 = vpop.permute.xlu1 %3577 }
 0xaad   :  { %v3570_v34 = vunpack.i.h.bf16 %v3568_v33  ;;  %v3569_v35 = vunpack.i.l.bf16 %v3568_v33  ;;  %3411 = vmatprep.subr.msk.bf16.mxu0 %vm4067_vm2, %v3409_v32  ;;  %v3580_v42 = vunpack.i.h.bf16 %v3578_v21  ;;  %v3579_v43 = vunpack.i.l.bf16 %v3578_v21 }
 0xaae   :  { %3414 = vmatpush3.bf16.xpose.msk.msra.mxu0 %vm4067_vm2, %v3409_v32 }
 0xaaf   :  { %v3415_v36 = vpack.c.bf16 %v3570_v34, %v3569_v35  ;;  %v3435_v46 = vpack.c.bf16 %v3580_v42, %v3579_v43 }
 0xab0   :  { %v3573_v38 = vpop.permute.xlu0 %3572  ;;  %v2212_v54 = vpop.permute.xlu1 %2211 }
 0xab1   :  { %v3575_v39 = vunpack.i.h.bf16 %v3573_v38  ;;  %v3574_v20 = vunpack.i.l.bf16 %v3573_v38  ;;  %3417 = vmatprep.subr.msk.bf16.mxu0 %vm4067_vm2, %v3415_v36 }
 0xab3   :  { %v3429_v41 = vpack.c.bf16 %v3575_v39, %v3574_v20 }
 0xab4   :  { %v1836_v40 = vpop.permute.xlu0 %1835 }
 0xab6   :  { %3420 = vmatpush3.bf16.xpose.msk.msra.mxu0 %vm4067_vm2, %v3415_v36 }
 0xab7   :  { %3431 = vmatprep.subr.msk.bf16.mxu0 %vm4067_vm2, %v3429_v41 }
 0xab8   :  { %v1838_v18 = vpop.permute.xlu0 %1837 }
 0xabc   :  { %v3583_v47 = vpop.permute.xlu0 %3582 }
 0xabd   :  { %3254 = vmatmul.mubr.msk.f32.vlgmr.msra.gmra.mrb[12].mxu0 %vm275_vm1, %v4230_v30  ;;  %v3585_v48 = vunpack.i.h.bf16 %v3583_v47  ;;  %v3584_v49 = vunpack.i.l.bf16 %v3583_v47 }
 0xabe   :  { %3434 = vmatpush3.bf16.xpose.msk.msra.mxu0 %vm4067_vm2, %v3429_v41  ;;  %3275 = vmatprep.mubr.msk.f32.mxu0 %vm275_vm1, %v1836_v40 }
 0xabf   :  { %3437 = vmatprep.subr.msk.bf16.mxu0 %vm4067_vm2, %v3435_v46  ;;  %v3449_v50 = vpack.c.bf16 %v3585_v48, %v3584_v49 }
 0xac0   :  { %v3588_v51 = vpop.permute.xlu0 %3587 }
 0xac1   :  { %v3590_v52 = vunpack.i.h.bf16 %v3588_v51  ;;  %v3589_v53 = vunpack.i.l.bf16 %v3588_v51 }
 0xac3   :  { %v3455_v56 = vpack.c.bf16 %v3590_v52, %v3589_v53 }
 0xac4   :  { %v2214_v57 = vpop.permute.xlu0 %2213 }
 0xac6   :  { %3440 = vmatpush3.bf16.xpose.msk.msra.mxu0 %vm4067_vm2, %v3435_v46 }
 0xac7   :  { %3451 = vmatprep.subr.msk.bf16.mxu0 %vm4067_vm2, %v3449_v50 }
 0xacd   :  { %3276 = vmatmul.mubr.msk.f32.vlgmr.msra.gmra.mrb[14].mxu0 %vm275_vm1, %v1838_v18 }
 0xace   :  { %3454 = vmatpush3.bf16.xpose.msk.msra.mxu0 %vm4067_vm2, %v3449_v50  ;;  %3307 = vmatprep.mubr.msk.f32.mxu0 %vm275_vm1, %v2212_v54 }
 0xacf   :  { %3457 = vmatprep.subr.msk.bf16.mxu0 %vm4067_vm2, %v3455_v56 }
 0xad6   :  { %3460 = vmatpush3.bf16.xpose.msk.msra.mxu0 %vm4067_vm2, %v3455_v56 }
 0xadd   :  { %3308 = vmatmul.mubr.msk.f32.vlgmr.msra.gmra.mrb[16].mxu0 %vm275_vm1, %v2214_v57 }
 0xb90   :  { %v3255_v63 = vpop.f32.mrb[12].mxu0 }
 0xb91   :  { %v1713_v0 = vadd.f32 %v3255_v63, %v4086_v44  ;;  %v1707_v1 = vpop.f32.mrb[13].mxu0 }
 0xb92   :  { %v1708_v2 = vadd.f32 %v1707_v1, %v4088_v45 }
 0xb93   :  { %v1719_v4 = vsel %vm167_vm0, %v1713_v0, -inf }
 0xb94   :  { %1720 = vmax.xlane.f32.xlu0 %v1719_v4  ;;  %v1716_v6 = vsel %vm167_vm0, %v1708_v2, -inf }
 0xb95   :  { %1717 = vmax.xlane.f32.xlu1 %v1716_v6 }
 0xba0   :  { %v3277_v7 = vpop.f32.mrb[14].mxu0 }
 0xba1   :  { %v1931_v8 = vadd.f32 %v3277_v7, %v4086_v44  ;;  %v1925_v11 = vpop.f32.mrb[15].mxu0 }
 0xba2   :  { %v1926_v16 = vadd.f32 %v1925_v11, %v4088_v45 }
 0xba3   :  { %v1937_v17 = vsel %vm167_vm0, %v1931_v8, -inf }
 0xba4   :  { %1938 = vmax.xlane.f32.xlu1 %v1937_v17  ;;  %v1934_v22 = vsel %vm167_vm0, %v1926_v16, -inf }
 0xba5   :  { %1935 = vmax.xlane.f32.xlu0 %v1934_v22 }
 0xbb0   :  { %v3309_v25 = vpop.f32.mrb[16].mxu0 }
 0xbb1   :  { %v2301_v14 = vpop.f32.mrb[17].mxu0  ;;  %v2307_v59 = vadd.f32 %v3309_v25, %v4086_v44 }
 0xbb2   :  { %v2302_v58 = vadd.f32 %v2301_v14, %v4088_v45 }
 0xbb4   :  { %v2310_v61 = vsel %vm167_vm0, %v2302_v58, -inf }
 0xbb5   :  { %3597 = vrot.lane.b32.xlu1 %v4280_v15, %s3868_s27 }
 0xbbb   :  { %3592 = vrot.lane.b32.xlu0 %v4286_v5, %s3868_s27 }
 0xc21   :  { %v1721_v37 = vpop.xlane.xlu0 %1720 }
 0xc22   :  { %v1723_v31 = vsub.f32 %v1713_v0, %v1721_v37  ;;  %v1718_v32 = vpop.xlane.xlu1 %1717 }
 0xc23   :  { %v1722_v33 = vsub.f32 %v1708_v2, %v1718_v32 }
 0xc24   :  { %v1726_v34 = vmul.f32 1.442695, %v1723_v31 }
 0xc25   :  { %v1724_v35 = vmul.f32 1.442695, %v1722_v33 }
 0xc26   :  { %3677 = vpow2.f32 %v1726_v34 }
 0xc27   :  { %3679 = vpow2.f32 %v1724_v35 }
 0xc30   :  { %v3678_v36 = vpop.eup %3677 }
 0xc31   :  { %v3680_v38 = vpop.eup %3679  ;;  %v1939_v39 = vpop.xlane.xlu1 %1938  ;;  %v1731_v12 = vsel %vm167_vm0, %v3678_v36, 0.0 }
 0xc32   :  { %v1941_v20 = vsub.f32 %v1931_v8, %v1939_v39  ;;  %v1936_v40 = vpop.xlane.xlu0 %1935  ;;  %1732 = vadd.xlane.f32.xlu1 %v1731_v12  ;;  %v1728_v41 = vsel %vm167_vm0, %v3680_v38, 0.0 }
 0xc33   :  { %v1940_v21 = vsub.f32 %v1926_v16, %v1936_v40  ;;  %1729 = vadd.xlane.f32.xlu0 %v1728_v41 }
 0xc34   :  { %v1944_v18 = vmul.f32 1.442695, %v1941_v20 }
 0xc35   :  { %v1942_v42 = vmul.f32 1.442695, %v1940_v21  ;;  %v3598_v43 = vpop.permute.xlu1 %3597 }
 0xc36   :  { %3681 = vpow2.f32 %v1944_v18  ;;  %v3593_v46 = vpop.permute.xlu0 %3592  ;;  %v3600_v47 = vunpack.i.h.bf16 %v3598_v43  ;;  %v3599_v48 = vunpack.i.l.bf16 %v3598_v43 }
 0xc37   :  { %3683 = vpow2.f32 %v1942_v42  ;;  %v3595_v49 = vunpack.i.h.bf16 %v3593_v46  ;;  %v3594_v50 = vunpack.i.l.bf16 %v3593_v46 }
 0xc38   :  { %v3425_v52 = vpack.c.bf16 %v3600_v47, %v3599_v48  ;;  %v1611_v47 = vld [vmem:[#allocation10 + $0x20] sm:$0xff] }
 0xc39   :  { %v3421_v51 = vpack.c.bf16 %v3595_v49, %v3594_v50 }
 0xc3b   :  { %3422 = vmatprep.subr.bf16.mxu1 %v3421_v51 }
 0xc3c   :  { %3424 = vmatpush3.bf16.msra.mxu1 %v3421_v51 }
 0xc3d   :  { %3426 = vmatprep.subr.bf16.mxu1 %v3425_v52 }
 0xc40   :  { %v3682_v53 = vpop.eup %3681  ;;  %3428 = vmatpush3.bf16.msra.mxu1 %v3425_v52 }
 0xc41   :  { %v3684_v54 = vpop.eup %3683  ;;  %v1949_v56 = vsel %vm167_vm0, %v3682_v53, 0.0 }
 0xc42   :  { %1950 = vadd.xlane.f32.xlu1 %v1949_v56  ;;  %v1946_v57 = vsel %vm167_vm0, %v3684_v54, 0.0 }
 0xc43   :  { %1947 = vadd.xlane.f32.xlu0 %v1946_v57 }
 0xc53   :  { %3602 = vrot.lane.b32.xlu1 %v4286_v5, %s3870_s2 }
 0xc57   :  { %3612 = vrot.lane.b32.xlu1 %v4211_v27, %s3873_s9  ;;  %v2313_v27 = vsel %vm167_vm0, %v2307_v59, -inf }
 0xc59   :  { %3607 = vrot.lane.b32.xlu0 %v4280_v15, %s3870_s2 }
 0xc5b   :  { %2508 = vrot.lane.b32.xlu1 %v4205_v19, %s3872_s0 }
 0xc5d   :  { %3617 = vrot.lane.b32.xlu0 %v4217_v9, %s3873_s9 }
 0xc61   :  { %2510 = vrot.lane.b32.xlu0 %v4230_v30, %s3872_s0 }
 0xc7f   :  { %2311 = vmax.xlane.f32.xlu1 %v2310_v61 }
 0xc80   :  { %2314 = vmax.xlane.f32.xlu0 %v2313_v27 }
 0xcbf   :  { %v1733_v62 = vpop.xlane.xlu1 %1732 }
 0xcc0   :  { %3685 = vrcp.f32 %v1733_v62  ;;  %v1730_v63 = vpop.xlane.xlu0 %1729 }
 0xcc1   :  { %3687 = vrcp.f32 %v1730_v63 }
 0xcca   :  { %v3686_v19 = vpop.eup %3685 }
 0xccb   :  { %v3688_v0 = vpop.eup %3687  ;;  %v1737_v1 = vmul.f32 %v3686_v19, %v3678_v36 }
 0xccc   :  { %v1736_v9 = vmul.f32 %v3688_v0, %v3680_v38 }
 0xcce   :  { %3264 = vmatprep.mubr.msk.f32.mxu1 %vm167_vm0, %v1736_v9 }
 0xccf   :  { %v1951_v30 = vpop.xlane.xlu1 %1950  ;;  %3265 = vmatmul.mubr.msk.f32.vlgmr.msra.gmra.mrb[20].mxu1 %vm167_vm0, %v1737_v1 }
 0xcd0   :  { %3689 = vrcp.f32 %v1951_v30  ;;  %v1948_v2 = vpop.xlane.xlu0 %1947 }
 0xcd1   :  { %3691 = vrcp.f32 %v1948_v2 }
 0xcd3   :  { %v3603_v4 = vpop.permute.xlu1 %3602 }
 0xcd4   :  { %v3605_v6 = vunpack.i.h.bf16 %v3603_v4  ;;  %v3604_v7 = vunpack.i.l.bf16 %v3603_v4  ;;  %v3608_v8 = vpop.permute.xlu0 %3607 }
 0xcd5   :  { %v3610_v11 = vunpack.i.h.bf16 %v3608_v8  ;;  %v3609_v16 = vunpack.i.l.bf16 %v3608_v8  ;;  %v1613_v8 = vld [vmem:[#allocation10 + $0x30] sm:$0xff] }
 0xcd6   :  { %v3441_v17 = vpack.c.bf16 %v3605_v6, %v3604_v7 }
 0xcd7   :  { %v3445_v22 = vpack.c.bf16 %v3610_v11, %v3609_v16  ;;  %v3613_v23 = vpop.permute.xlu1 %3612 }
 0xcd8   :  { %v3615_v24 = vunpack.i.h.bf16 %v3613_v23  ;;  %v3614_v25 = vunpack.i.l.bf16 %v3613_v23  ;;  %v3618_v14 = vpop.permute.xlu0 %3617  ;;  %3442 = vmatprep.subr.bf16.mxu1 %v3441_v17 }
 0xcd9   :  { %v3620_v28 = vunpack.i.h.bf16 %v3618_v14  ;;  %v3619_v29 = vunpack.i.l.bf16 %v3618_v14  ;;  %3444 = vmatpush3.bf16.msra.mxu1 %v3441_v17 }
 0xcda   :  { %v3690_v37 = vpop.eup %3689  ;;  %v3469_v31 = vpack.c.bf16 %v3615_v24, %v3614_v25  ;;  %3446 = vmatprep.subr.bf16.mxu1 %v3445_v22 }
 0xcdb   :  { %v3692_v32 = vpop.eup %3691  ;;  %v3475_v33 = vpack.c.bf16 %v3620_v28, %v3619_v29  ;;  %v2509_v34 = vpop.permute.xlu1 %2508  ;;  %v1955_v36 = vmul.f32 %v3690_v37, %v3682_v53 }
 0xcdc   :  { %3471 = vmatprep.subr.msk.bf16.mxu0 %vm4067_vm2, %v3469_v31  ;;  %3334 = vmatprep.mubr.msk.f32.mxu0 %vm275_vm1, %v2509_v34  ;;  %v1954_v35 = vmul.f32 %v3692_v32, %v3684_v54  ;;  %v2511_v38 = vpop.permute.xlu0 %2510 }
 0xcdd   :  { %3448 = vmatpush3.bf16.msra.mxu1 %v3445_v22  ;;  %3474 = vmatpush3.bf16.xpose.msk.msra.mxu0 %vm4067_vm2, %v3469_v31 }
 0xcde   :  { %3286 = vmatprep.mubr.msk.f32.mxu1 %vm167_vm0, %v1954_v35  ;;  %3477 = vmatprep.subr.msk.bf16.mxu0 %vm4067_vm2, %v3475_v33 }
 0xcdf   :  { %3289 = vmatprep.subr.mxu1 %v1612_v26 }
 0xce0   :  { %3287 = vmatmul.mubr.msk.f32.vlgmr.msra.gmra.mrb[22].mxu1 %vm167_vm0, %v1955_v36 }
 0xce1   :  { %3290 = vmatpush3.msra.mxu1 %v1612_v26 }
 0xce2   :  { %3294 = vmatprep.subr.mxu1 %v1611_v47 }
 0xce5   :  { %3480 = vmatpush3.bf16.xpose.msk.msra.mxu0 %vm4067_vm2, %v3475_v33 }
 0xcec   :  { %3335 = vmatmul.mubr.msk.f32.vlgmr.msra.gmra.mrb[18].mxu0 %vm275_vm1, %v2511_v38 }
 0xd0c   :  { %v2312_v39 = vpop.xlane.xlu1 %2311 }
 0xd0d   :  { %v2316_v12 = vsub.f32 %v2302_v58, %v2312_v39  ;;  %v2315_v20 = vpop.xlane.xlu0 %2314 }
 0xd0e   :  { %v2317_v40 = vsub.f32 %v2307_v59, %v2315_v20 }
 0xd0f   :  { %v2318_v41 = vmul.f32 1.442695, %v2316_v12 }
 0xd10   :  { %v2320_v21 = vmul.f32 1.442695, %v2317_v40  ;;  %v1614_v40 = vld [vmem:[#allocation10 + $0x38] sm:$0xff] }
 0xd11   :  { %3693 = vpow2.f32 %v2318_v41 }
 0xd12   :  { %3695 = vpow2.f32 %v2320_v21 }
 0xd1b   :  { %v3694_v18 = vpop.eup %3693 }
 0xd1c   :  { %v3696_v42 = vpop.eup %3695  ;;  %v2322_v43 = vsel %vm167_vm0, %v3694_v18, 0.0 }
 0xd1d   :  { %2323 = vadd.xlane.f32.xlu0 %v2322_v43  ;;  %v2325_v46 = vsel %vm167_vm0, %v3696_v42, 0.0 }
 0xd1e   :  { %2326 = vadd.xlane.f32.xlu1 %v2325_v46 }
 0xd2f   :  { %3627 = vrot.lane.b32.xlu1 %v4280_v15, %s3874_s10 }
 0xd33   :  { %3622 = vrot.lane.b32.xlu0 %v4286_v5, %s3874_s10 }
 0xda2   :  { %v3266_v48 = vpop.f32.mrb[20].mxu1 }
 0xda3   :  { %v1826_v49 = vpop.f32.mrb[21].mxu1 }
 0xdaa   :  { %v2324_v50 = vpop.xlane.xlu0 %2323 }
 0xdab   :  { %3697 = vrcp.f32 %v2324_v50  ;;  %v2327_v52 = vpop.xlane.xlu1 %2326 }
 0xdac   :  { %3699 = vrcp.f32 %v2327_v52 }
 0xdae   :  { %v3623_v51 = vpop.permute.xlu0 %3622 }
 0xdaf   :  { %v3625_v53 = vunpack.i.h.bf16 %v3623_v51  ;;  %v3624_v54 = vunpack.i.l.bf16 %v3623_v51  ;;  %v3628_v59 = vpop.permute.xlu1 %3627 }
 0xdb0   :  { %v3630_v27 = vunpack.i.h.bf16 %v3628_v59  ;;  %v3629_v62 = vunpack.i.l.bf16 %v3628_v59 }
 0xdb1   :  { %v3461_v58 = vpack.c.bf16 %v3625_v53, %v3624_v54 }
 0xdb2   :  { %v3465_v19 = vpack.c.bf16 %v3630_v27, %v3629_v62 }
 0xdb3   :  { %v3288_v56 = vpop.f32.mrb[22].mxu1 }
 0xdb4   :  { %v2040_v57 = vpop.f32.mrb[23].mxu1 }
 0xdb5   :  { %3291 = vmatprep.mubr.msk.f32.mxu1 %vm275_vm1, %v2040_v57  ;;  %v3698_v61 = vpop.eup %3697 }
 0xdb6   :  { %3292 = vmatmul.mubr.msk.f32.vlgmr.msra.gmra.mrb[24].mxu1 %vm275_vm1, %v3288_v56  ;;  %v2330_v63 = vmul.f32 %v3698_v61, %v3694_v18  ;;  %v3700_v30 = vpop.eup %3699 }
 0xdb7   :  { %3295 = vmatpush3.msra.mxu1 %v1611_v47  ;;  %3296 = vmatprep.mubr.msk.f32.mxu1 %vm275_vm1, %v1826_v49  ;;  %v2331_v7 = vmul.f32 %v3700_v30, %v3696_v42  ;;  %v2808_v42 = vrot.slane %v4165_v3, %v1463_v10  ;;  %v2845_v30 = vsub.s32 4, %v4035_v13 }
 0xdb8   :  { %3462 = vmatprep.subr.bf16.mxu1 %v3461_v58 }
 0xdbe   :  { %3297 = vmatmul.mubr.msk.f32.vlgmr.msra.gmra.mrb[24].mxu1 %vm275_vm1, %v3266_v48 }
 0xdbf   :  { %3464 = vmatpush3.bf16.msra.mxu1 %v3461_v58  ;;  %3318 = vmatprep.mubr.msk.f32.mxu1 %vm167_vm0, %v2330_v63  ;;  %v3336_v0 = vpop.f32.mrb[18].mxu0 }
 0xdc0   :  { %3466 = vmatprep.subr.bf16.mxu1 %v3465_v19  ;;  %v2604_v9 = vadd.f32 %v3336_v0, %v4086_v44  ;;  %v2598_v1 = vpop.f32.mrb[19].mxu0 }
 0xdc1   :  { %v2599_v2 = vadd.f32 %v2598_v1, %v4088_v45 }
 0xdc2   :  { %v2610_v4 = vsel %vm167_vm0, %v2604_v9, -inf }
 0xdc3   :  { %3468 = vmatpush3.bf16.msra.mxu1 %v3465_v19  ;;  %2611 = vmax.xlane.f32.xlu0 %v2610_v4  ;;  %v2607_v6 = vsel %vm167_vm0, %v2599_v2, -inf }
 0xdc4   :  { %2608 = vmax.xlane.f32.xlu1 %v2607_v6  ;;  %3321 = vmatprep.subr.mxu1 %v1613_v8  ;;  %v2846_v6 = vrot.slane %v4165_v3, %v2845_v30 }
 0xdc6   :  { %3319 = vmatmul.mubr.msk.f32.vlgmr.msra.gmra.mrb[26].mxu1 %vm167_vm0, %v2331_v7 }
 0xdc7   :  { %3322 = vmatpush3.msra.mxu1 %v1613_v8 }
 0xe50   :  { %v2612_v11 = vpop.xlane.xlu0 %2611 }
 0xe51   :  { %v2614_v16 = vsub.f32 %v2604_v9, %v2612_v11  ;;  %v2609_v44 = vpop.xlane.xlu1 %2608 }
 0xe52   :  { %v2613_v17 = vsub.f32 %v2599_v2, %v2609_v44  ;;  %v2851_v2 = vsub.s32 5, %v4035_v13 }
 0xe53   :  { %v2617_v22 = vmul.f32 1.442695, %v2614_v16 }
 0xe54   :  { %v2615_v23 = vmul.f32 1.442695, %v2613_v17  ;;  %v2852_v44 = vrot.slane %v4165_v3, %v2851_v2 }
 0xe55   :  { %3701 = vpow2.f32 %v2617_v22 }
 0xe56   :  { %3703 = vpow2.f32 %v2615_v23 }
 0xe5f   :  { %v3702_v45 = vpop.eup %3701 }
 0xe60   :  { %v3704_v24 = vpop.eup %3703  ;;  %v2622_v25 = vsel %vm167_vm0, %v3702_v45, 0.0 }
 0xe61   :  { %2623 = vadd.xlane.f32.xlu1 %v2622_v25  ;;  %v2619_v14 = vsel %vm167_vm0, %v3704_v24, 0.0 }
 0xe62   :  { %2620 = vadd.xlane.f32.xlu0 %v2619_v14 }
 0xe72   :  { %3637 = vrot.lane.b32.xlu1 %v4280_v15, %s3875_s11 }
 0xe78   :  { %3632 = vrot.lane.b32.xlu0 %v4286_v5, %s3875_s11 }
 0xe99   :  { %v3320_v28 = vpop.f32.mrb[26].mxu1 }
 0xe9a   :  { %v2416_v29 = vpop.f32.mrb[27].mxu1 }
 0xe9b   :  { %3323 = vmatprep.mubr.msk.f32.mxu1 %vm275_vm1, %v2416_v29 }
 0xe9c   :  { %3324 = vmatmul.mubr.msk.f32.vlgmr.msra.gmra.mrb[24].mxu1 %vm275_vm1, %v3320_v28 }
 0xeee   :  { %v2624_v37 = vpop.xlane.xlu1 %2623 }
 0xeef   :  { %v2621_v31 = vpop.xlane.xlu0 %2620 }
 0xef0   :  { %3705 = vrcp.f32 %v2621_v31 }
 0xef1   :  { %3707 = vrcp.f32 %v2624_v37 }
 0xef2   :  { %v3638_v32 = vpop.permute.xlu1 %3637 }
 0xef3   :  { %v3633_v33 = vpop.permute.xlu0 %3632  ;;  %v3640_v34 = vunpack.i.h.bf16 %v3638_v32  ;;  %v3639_v35 = vunpack.i.l.bf16 %v3638_v32 }
 0xef4   :  { %v3635_v36 = vunpack.i.h.bf16 %v3633_v33  ;;  %v3634_v38 = vunpack.i.l.bf16 %v3633_v33 }
 0xef5   :  { %v3485_v39 = vpack.c.bf16 %v3640_v34, %v3639_v35 }
 0xef6   :  { %v3481_v15 = vpack.c.bf16 %v3635_v36, %v3634_v38 }
 0xef8   :  { %3482 = vmatprep.subr.bf16.mxu1 %v3481_v15 }
 0xef9   :  { %3484 = vmatpush3.bf16.msra.mxu1 %v3481_v15 }
 0xefa   :  { %v3706_v5 = vpop.eup %3705  ;;  %3486 = vmatprep.subr.bf16.mxu1 %v3485_v39 }
 0xefb   :  { %v3708_v12 = vpop.eup %3707  ;;  %v2627_v20 = vmul.f32 %v3706_v5, %v3704_v24 }
 0xefc   :  { %v2628_v41 = vmul.f32 %v3708_v12, %v3702_v45 }
 0xefd   :  { %3488 = vmatpush3.bf16.msra.mxu1 %v3485_v39  ;;  %3345 = vmatprep.mubr.msk.f32.mxu1 %vm167_vm0, %v2627_v20 }
 0xefe   :  { %3348 = vmatprep.subr.mxu1 %v1614_v40 }
 0xf00   :  { %3346 = vmatmul.mubr.msk.f32.vlgmr.msra.gmra.mrb[28].mxu1 %vm167_vm0, %v2628_v41 }
 0xf01   :  { %3349 = vmatpush3.msra.mxu1 %v1614_v40 }
 0xfd3   :  { %v3347_v21 = vpop.f32.mrb[28].mxu1 }
 0xfd4   :  { %v2713_v18 = vpop.f32.mrb[29].mxu1 }
 0xfd5   :  { %3350 = vmatprep.mubr.msk.f32.mxu1 %vm275_vm1, %v2713_v18 }
 0xfd6   :  { %3351 = vmatmul.mubr.msk.f32.vlgmr.msra.gmra.mrb[24].mxu1 %vm275_vm1, %v3347_v21 }
0x10a9   :  { %v3352_v43 = vpop.f32.mrb[24].mxu1 }
0x10aa   :  { %v2810_v46 = vadd.f32 %v3352_v43, %v2808_v42  ;;  %v2794_v26 = vpop.f32.mrb[25].mxu1  ;;  %v2889_v43 = vsub.s32 6, %v4035_v13 }
0x10ab   :  { %v2809_v47 = vadd.f32 %v2808_v42, %v2794_v26 }
0x10ac   :  { %v2812_v48 = vadd.f32 %v2810_v46, %v4184_v60  ;;  %v2895_v46 = vsub.s32 7, %v4035_v13 }
0x10ad   :  { %v2811_v49 = vadd.f32 %v2809_v47, %v4180_v55  ;;  %v2890_v47 = vrot.slane %v4165_v3, %v2889_v43 }
0x10ae   :  { %v2816_v50 = vsel %vm167_vm0, %v2812_v48, 0.0  ;;  %v2822_v53 = vmul.f32 %v2812_v48, %v2812_v48 }
0x10af   :  { %2817 = vadd.xlane.f32.xlu0 %v2816_v50  ;;  %v2813_v51 = vsel %vm167_vm0, %v2811_v49, 0.0  ;;  %v2821_v52 = vmul.f32 %v2811_v49, %v2811_v49 }
0x10b0   :  { %2814 = vadd.xlane.f32.xlu1 %v2813_v51  ;;  %v2826_v10 = vsel %vm167_vm0, %v2822_v53, 0.0 }
0x10b1   :  { %v2823_v54 = vsel %vm167_vm0, %v2821_v52, 0.0  ;;  %v2896_v52 = vrot.slane %v4165_v3, %v2895_v46 }
0x10b3   :  { %2824 = vadd.xlane.f32.xlu0 %v2823_v54 }
0x10b4   :  { %2827 = vadd.xlane.f32.xlu1 %v2826_v10 }
0x113c   :  { %v2818_v56 = vpop.xlane.xlu0 %2817 }
0x113d   :  { %v2815_v57 = vpop.xlane.xlu1 %2814  ;;  %v2820_v58 = vmul.f32 0.03125, %v2818_v56 }
0x113e   :  { %v2819_v60 = vmul.f32 0.03125, %v2815_v57 }
0x113f   :  { %v2832_v62 = vmul.f32 %v2820_v58, %v2820_v58  ;;  %v2836_v8 = vsub.f32 %v2812_v48, %v2820_v58 }
0x1140   :  { %v2831_v59 = vmul.f32 %v2819_v60, %v2819_v60  ;;  %v2825_v55 = vpop.xlane.xlu0 %2824  ;;  %v2835_v4 = vsub.f32 %v2811_v49, %v2819_v60 }
0x1141   :  { %v2829_v61 = vmul.f32 0.03125, %v2825_v55  ;;  %v2828_v27 = vpop.xlane.xlu1 %2827 }
0x1142   :  { %v2830_v63 = vmul.f32 0.03125, %v2828_v27 }
0x1143   :  { %v2833_v19 = vsub.f32 %v2829_v61, %v2831_v59 }
0x1144   :  { %v2834_v0 = vsub.f32 %v2830_v63, %v2832_v62 }
0x1145   :  { %v2837_v9 = vadd.f32 1e-05, %v2833_v19 }
0x1146   :  { %v2838_v1 = vadd.f32 1e-05, %v2834_v0 }
0x1147   :  { %3709 = vrsqrt.f32 %v2837_v9 }
0x1148   :  { %3711 = vrsqrt.f32 %v2838_v1 }
0x1151   :  { %v3710_v7 = vpop.eup %3709 }
0x1152   :  { %v3712_v11 = vpop.eup %3711  ;;  %v2841_v16 = vmul.f32 %v3710_v7, %v2835_v4 }
0x1153   :  { %v2842_v17 = vmul.f32 %v3712_v11, %v2836_v8 }
0x1154   :  { %v2847_v22 = vmul.f32 %v2846_v6, %v2841_v16 }
0x1155   :  { %v2848_v23 = vmul.f32 %v2846_v6, %v2842_v17 }
0x1156   :  { %v2853_v45 = vadd.f32 %v2852_v44, %v2847_v22 }
0x1157   :  { %v2854_v24 = vadd.f32 %v2852_v44, %v2848_v23 }
0x1158   :  { %v2855_v25 = vadd.f32 %v2853_v45, %v2853_v45 }
0x1159   :  { %v2856_v14 = vadd.f32 %v2854_v24, %v2854_v24 }
0x115a   :  { %v2857_v28 = vsel %vm167_vm0, %v2855_v25, 0.0  ;;  %v2865_v29 = vmul.f32 %v2855_v25, %v2855_v25 }
0x115b   :  { %2858 = vadd.xlane.f32.xlu0 %v2857_v28  ;;  %v2860_v37 = vsel %vm167_vm0, %v2856_v14, 0.0  ;;  %v2866_v31 = vmul.f32 %v2856_v14, %v2856_v14 }
0x115c   :  { %2861 = vadd.xlane.f32.xlu1 %v2860_v37  ;;  %v2867_v32 = vsel %vm167_vm0, %v2865_v29, 0.0 }
0x115d   :  { %v2870_v33 = vsel %vm167_vm0, %v2866_v31, 0.0 }
0x115f   :  { %2868 = vadd.xlane.f32.xlu0 %v2867_v32 }
0x1160   :  { %2871 = vadd.xlane.f32.xlu1 %v2870_v33 }
0x11e8   :  { %v2859_v34 = vpop.xlane.xlu0 %2858 }
0x11e9   :  { %v2863_v35 = vmul.f32 0.03125, %v2859_v34  ;;  %v2862_v36 = vpop.xlane.xlu1 %2861 }
0x11ea   :  { %v2864_v38 = vmul.f32 0.03125, %v2862_v36 }
0x11eb   :  { %v2875_v39 = vmul.f32 %v2863_v35, %v2863_v35  ;;  %v2879_v26 = vsub.f32 %v2855_v25, %v2863_v35 }
0x11ec   :  { %v2869_v15 = vpop.xlane.xlu0 %2868  ;;  %v2876_v20 = vmul.f32 %v2864_v38, %v2864_v38  ;;  %v2880_v49 = vsub.f32 %v2856_v14, %v2864_v38 }
0x11ed   :  { %v2873_v5 = vmul.f32 0.03125, %v2869_v15  ;;  %v2872_v12 = vpop.xlane.xlu1 %2871 }
0x11ee   :  { %v2874_v40 = vmul.f32 0.03125, %v2872_v12 }
0x11ef   :  { %v2877_v41 = vsub.f32 %v2873_v5, %v2875_v39 }
0x11f0   :  { %v2878_v21 = vsub.f32 %v2874_v40, %v2876_v20 }
0x11f1   :  { %v2881_v18 = vadd.f32 1e-05, %v2877_v41 }
0x11f2   :  { %v2882_v42 = vadd.f32 1e-05, %v2878_v21 }
0x11f3   :  { %3713 = vrsqrt.f32 %v2881_v18 }
0x11f4   :  { %3715 = vrsqrt.f32 %v2882_v42 }
0x11fd   :  { %v3714_v48 = vpop.eup %3713 }
0x11fe   :  { %v3716_v50 = vpop.eup %3715  ;;  %v2885_v51 = vmul.f32 %v3714_v48, %v2879_v26 }
0x11ff   :  { %v2886_v53 = vmul.f32 %v3716_v50, %v2880_v49 }
0x1200   :  { %v2891_v54 = vmul.f32 %v2890_v47, %v2885_v51 }
0x1201   :  { %v2892_v10 = vmul.f32 %v2890_v47, %v2886_v53 }
0x1202   :  { %v2897_v56 = vadd.f32 %v2896_v52, %v2891_v54 }
0x1203   :  { %v2898_v57 = vadd.f32 %v2896_v52, %v2892_v10 }
0x1204   :  { %2899 = vst.msk [vmem:[#allocation11] sm:$0xff] %vm167_vm0, %v2897_v56 }
0x1205   :  { %2900 = vst.msk [vmem:[#allocation11 + $0x8] sm:$0xff] %vm167_vm0, %v2898_v57 }
0x1206   :  { %3838 = shalt.err (!%p3835_p2)
}
0x1207   :  { %s3839_s21 = scalar_lea.hbm %s4398_s8, 256 }
0x1208   :  { %p3840_p3 = scmp.ne.s32.totalorder %s4398_s8, %s3839_s21  ;;  %p3843_p4 = scmp.lt.u32.totalorder %s3839_s21, %s4398_s8 }
0x120a   :  { %p3845_p5 = pnand %p3843_p4, %p3840_p3 }
0x120c   :  { %3848 = shalt.err (!%p3845_p5)
}
0x120d   :  { %2912 = dma.vmem_to_hbm [thread:$0]  %s2907_s15, 256, %s4398_s8, [#allocation4], %s3859_s17, %s3859_s17, %s3860_s18  }
0x120e   :  { %3855 = dma.done.wait [#allocation4], 256  }
0x120f   :  { %3856 = vsyncadd [#allocation4], 4294967040 }
0x1210   :  { %2916 = vsyncpa [#allocation3], 1 }
0x1211   :  { %2917 = vsyncpa [#allocation6], 1 }
0x1212   :  { %2918 = vsyncpa [#allocation9], 1 }
0x1213   :  { %2919 = vsyncpa [#allocation4], 1 }

</bundles_post_ra>
